<compile_context>
chip_gen: v7x
topology: tpu7x:2x2x1
jax: 0.10.0
libtpu: 0.0.40
codegen_flags: <defaults>
</compile_context>

<pallas_src>
import jax
import jax.numpy as jnp
from jax.experimental import pallas as pl
from jax.experimental.pallas import tpu as pltpu


# ----------------------------------------------------------------------------
# Kernel 1: one GIN layer, tiled over nodes.
#   grid = (N_pad // TM, N_pad // TK); axis 0 "parallel" (row tiles), axis 1
#   is the reduction over neighbour tiles.  acc_ref holds the (TM, F_pad)
#   partial of A' @ X in f32; the MLP runs once per row tile on the last k.
# ----------------------------------------------------------------------------
def gin_layer_kernel(a_ref, xk_ref, wa_ref, ba_ref, wb_ref, bb_ref,
                     out_ref, acc_ref):
    k = pl.program_id(1)

    @pl.when(k == 0)
    def _():
        acc_ref[...] = jnp.zeros_like(acc_ref)

    # bf16 x bf16 -> f32 accumulate on the MXU (self term is on A's diagonal).
    acc_ref[...] += jnp.dot(a_ref[...], xk_ref[...],
                            preferred_element_type=jnp.float32)

    @pl.when(k == pl.num_programs(1) - 1)
    def _():
        # Linear (BN folded) -> ReLU, bf16 operands / f32 accumulation.
        pre = acc_ref[...].astype(jnp.bfloat16)
        z = jnp.dot(pre, wa_ref[...],
                    preferred_element_type=jnp.float32) + ba_ref[...]
        z = jnp.maximum(z, 0.0).astype(jnp.bfloat16)
        # Linear -> ReLU
        h = jnp.dot(z, wb_ref[...],
                    preferred_element_type=jnp.float32) + bb_ref[...]
        out_ref[...] = jnp.maximum(h, 0.0).astype(out_ref.dtype)


def gin_layer(a, x, wa, ba, wb, bb, *, tm=256, tk=256):
    n_pad = a.shape[0]
    f_pad = x.shape[1]
    h_pad = wa.shape[1]
    grid = (n_pad // tm, n_pad // tk)
    return pl.pallas_call(
        gin_layer_kernel,
        out_shape=jax.ShapeDtypeStruct((n_pad, h_pad), jnp.bfloat16),
        grid_spec=pltpu.PrefetchScalarGridSpec(
            num_scalar_prefetch=0,
            grid=grid,
            in_specs=[
                pl.BlockSpec((tm, tk), lambda i, k: (i, k)),        # A' tile
                pl.BlockSpec((tk, f_pad), lambda i, k: (k, 0)),     # X rows (agg)
                pl.BlockSpec((f_pad, h_pad), lambda i, k: (0, 0)),  # W_a (BN folded, bf16)
                pl.BlockSpec((1, h_pad), lambda i, k: (0, 0)),      # b_a (folded)
                pl.BlockSpec((h_pad, h_pad), lambda i, k: (0, 0)),  # W_b (bf16)
                pl.BlockSpec((1, h_pad), lambda i, k: (0, 0)),      # b_b
            ],
            out_specs=pl.BlockSpec((tm, h_pad), lambda i, k: (i, 0)),
            scratch_shapes=[pltpu.VMEM((tm, f_pad), jnp.float32)],
        ),
        compiler_params=pltpu.CompilerParams(
            dimension_semantics=("parallel", "arbitrary"),
            vmem_limit_bytes=64 * 1024 * 1024),
    )(a, x, wa, ba, wb, bb)


# ----------------------------------------------------------------------------
# Kernel 2: graph-level epilogue, tiled over nodes.
#   grid = (N_pad // TN,): accumulate P @ h1 and P @ h2 into small f32
#   accumulators, then on the last step do lin1 -> ReLU -> dropout(eval)=id ->
#   lin2 -> masked log_softmax over the padded class lanes.
#   cat(g1, g2) @ W3 == g1 @ W3_top + g2 @ W3_bot (avoids in-kernel concat).
# ----------------------------------------------------------------------------
def gin_epilogue_kernel(p_ref, h1_ref, h2_ref, w3a_ref, w3b_ref, b3_ref,
                        w4_ref, b4_ref, out_ref, g1_acc, g2_acc,
                        *, num_classes):
    k = pl.program_id(0)

    @pl.when(k == 0)
    def _():
        g1_acc[...] = jnp.zeros_like(g1_acc)
        g2_acc[...] = jnp.zeros_like(g2_acc)

    g1_acc[...] += jnp.dot(p_ref[...], h1_ref[...],
                           preferred_element_type=jnp.float32)
    g2_acc[...] += jnp.dot(p_ref[...], h2_ref[...],
                           preferred_element_type=jnp.float32)

    @pl.when(k == pl.num_programs(0) - 1)
    def _():
        t = (jnp.dot(g1_acc[...], w3a_ref[...],
                     preferred_element_type=jnp.float32) +
             jnp.dot(g2_acc[...], w3b_ref[...],
                     preferred_element_type=jnp.float32) +
             b3_ref[...])
        t = jnp.maximum(t, 0.0)
        # TODO(synk): dropout(p=0.5) treated as eval-mode identity.
        logits = jnp.dot(t, w4_ref[...],
                         preferred_element_type=jnp.float32) + b4_ref[...]
        col = jax.lax.broadcasted_iota(jnp.int32, logits.shape, 1)
        logits = jnp.where(col < num_classes, logits, -1e30)
        m = jnp.max(logits, axis=1, keepdims=True)
        z = logits - m
        lse = jnp.log(jnp.sum(jnp.exp(z), axis=1, keepdims=True))
        out_ref[...] = jnp.where(col < num_classes, z - lse, 0.0)


def gin_epilogue(pool, h1, h2, w3a, w3b, b3, w4, b4, *, num_classes, tn=256):
    g_pad = pool.shape[0]
    n_pad = pool.shape[1]
    h_pad = h1.shape[1]
    c_pad = w4.shape[1]
    import functools
    kernel = functools.partial(gin_epilogue_kernel, num_classes=num_classes)
    return pl.pallas_call(
        kernel,
        out_shape=jax.ShapeDtypeStruct((g_pad, c_pad), jnp.float32),
        grid_spec=pltpu.PrefetchScalarGridSpec(
            num_scalar_prefetch=0,
            grid=(n_pad // tn,),
            in_specs=[
                pl.BlockSpec((g_pad, tn), lambda k: (0, k)),        # pool tile
                pl.BlockSpec((tn, h_pad), lambda k: (k, 0)),        # h1 tile
                pl.BlockSpec((tn, h_pad), lambda k: (k, 0)),        # h2 tile
                pl.BlockSpec((h_pad, h_pad), lambda k: (0, 0)),     # W3 (top rows)
                pl.BlockSpec((h_pad, h_pad), lambda k: (0, 0)),     # W3 (bot rows)
                pl.BlockSpec((1, h_pad), lambda k: (0, 0)),         # b3
                pl.BlockSpec((h_pad, c_pad), lambda k: (0, 0)),     # W4
                pl.BlockSpec((1, c_pad), lambda k: (0, 0)),         # b4
            ],
            out_specs=pl.BlockSpec((g_pad, c_pad), lambda k: (0, 0)),
            scratch_shapes=[pltpu.VMEM((g_pad, h_pad), jnp.float32),
                            pltpu.VMEM((g_pad, h_pad), jnp.float32)],
        ),
        compiler_params=pltpu.CompilerParams(
            dimension_semantics=("arbitrary",)),
    )(pool, h1, h2, w3a, w3b, b3, w4, b4)


def gin_forward(a_bf, x_bf, pool_bf, kp, *, num_classes, tm=256, tk=256,
                tn=256):
    h1 = gin_layer(a_bf, x_bf, kp["w1a"], kp["b1a"], kp["w1b"], kp["b1b"],
                   tm=tm, tk=tk)
    h2 = gin_layer(a_bf, h1, kp["w2a"], kp["b2a"], kp["w2b"], kp["b2b"],
                   tm=tm, tk=tk)
    out_pad = gin_epilogue(pool_bf, h1, h2, kp["w3a"], kp["w3b"], kp["b3"],
                           kp["w4"], kp["b4"], num_classes=num_classes, tn=tn)
    return out_pad[:, :num_classes]


# ----------------------------------------------------------------------------
# Wrapper glue (plain JAX): adjacency / pooling matrices, BN folding, padding.
# ----------------------------------------------------------------------------
def build_adjacency(edge_index, n_pad, *, eps=0.0):
    """Dense GIN aggregation matrix: A'[dst, src] += 1, plus (1+eps)*I."""
    src, dst = edge_index[0], edge_index[1]
    a = jnp.zeros((n_pad, n_pad), jnp.float32).at[dst, src].add(1.0)
    return a + (1.0 + eps) * jnp.eye(n_pad, dtype=jnp.float32)


def build_pool_matrix(batch, num_graphs_pad, n_pad):
    """P[g, i] = 1 if batch[i] == g (padded nodes excluded) -> P @ H = add_pool."""
    num_nodes = batch.shape[0]
    batch_pad = jnp.concatenate(
        [batch, jnp.full((n_pad - num_nodes,), -1, jnp.int32)])
    return (batch_pad[None, :] ==
            jnp.arange(num_graphs_pad)[:, None]).astype(jnp.float32)


def bn_fold(gamma, beta, mean, var, eps=1e-5):
    scale = gamma * jax.lax.rsqrt(var + eps)
    shift = beta - mean * scale
    return scale, shift


def pad_mat(m, rows, cols):
    return jnp.zeros((rows, cols), jnp.float32).at[:m.shape[0], :m.shape[1]].set(m)


def pad_vec_row(v, cols):
    return jnp.zeros((1, cols), jnp.float32).at[0, :v.shape[0]].set(v)


def reference_forward(a_real, x, pool_real, w1a_bf, b1a, w1b_bf, b1b,
                      w2a_bf, b2a, w2b_bf, b2b, w3, b3, w4, b4):
    """Pure-JAX GIN reference at real shapes with the same bf16 casts."""
    a_bf = a_real.astype(jnp.bfloat16)

    def layer(xin_bf, wa_bf, ba, wb_bf, bb):
        agg = jnp.dot(a_bf, xin_bf, preferred_element_type=jnp.float32)
        z = jnp.dot(agg.astype(jnp.bfloat16), wa_bf,
                    preferred_element_type=jnp.float32) + ba
        z = jnp.maximum(z, 0.0).astype(jnp.bfloat16)
        h = jnp.dot(z, wb_bf, preferred_element_type=jnp.float32) + bb
        return jnp.maximum(h, 0.0).astype(jnp.bfloat16)

    x_bf = x.astype(jnp.bfloat16)
    h1 = layer(x_bf, w1a_bf, b1a, w1b_bf, b1b)
    h2 = layer(h1, w2a_bf, b2a, w2b_bf, b2b)
    p_bf = pool_real.astype(jnp.bfloat16)
    g1 = jnp.dot(p_bf, h1, preferred_element_type=jnp.float32)
    g2 = jnp.dot(p_bf, h2, preferred_element_type=jnp.float32)
    hcat = jnp.concatenate([g1, g2], axis=1)
    t = jnp.maximum(hcat @ w3 + b3, 0.0)
    logits = t @ w4 + b4
    return jax.nn.log_softmax(logits, axis=1)


if __name__ == "__main__":
    key = jax.random.PRNGKey(0)
    dim_h = 32
    f_in = 7
    num_nodes = 16
    num_graphs = 2
    num_edges = 24
    num_classes = 2
    eps_gin = 0.0          # PyG GINConv default eps

    # Padded / tiled sizes: 256-wide MXU tiles, >= 2 row tiles for v7x megacore.
    TM = TK = TN = 256
    N_PAD = 512
    F_PAD = 128
    H_PAD = 128            # dim_h 32 -> 128 so MXU outputs / stores are lane-dense
    G_PAD = 8              # num_graphs 2 -> 8 sublanes (no sub-sublane blocks)
    C_PAD = 128            # classes 2 -> 128 padded output slab, sliced after

    keys = jax.random.split(key, 24)
    kit = iter(keys)

    def nrm(shape, s=0.2):
        return jax.random.normal(next(kit), shape, jnp.float32) * s

    def uni(shape, lo, hi):
        return jax.random.uniform(next(kit), shape, jnp.float32, lo, hi)

    # Graph inputs.  (GINConv ignores edge weights, so none are generated.)
    x = jax.random.normal(next(kit), (num_nodes, f_in), jnp.float32)
    edge_index = jax.random.randint(next(kit), (2, num_edges), 0, num_nodes,
                                    dtype=jnp.int32)
    batch = jnp.concatenate(
        [jnp.zeros((8,), jnp.int32), jnp.ones((8,), jnp.int32)])

    # GINConv 1 MLP: Linear(7, H) -> BN(H) -> ReLU -> Linear(H, H) -> ReLU
    w1a, b1a = nrm((f_in, dim_h)), nrm((dim_h,), 0.1)
    gamma1, beta1 = uni((dim_h,), 0.5, 1.5), nrm((dim_h,), 0.1)
    rmean1, rvar1 = nrm((dim_h,), 0.1), uni((dim_h,), 0.5, 1.5)
    w1b, b1b = nrm((dim_h, dim_h)), nrm((dim_h,), 0.1)
    # GINConv 2 MLP: Linear(H, H) -> BN(H) -> ReLU -> Linear(H, H) -> ReLU
    w2a, b2a = nrm((dim_h, dim_h)), nrm((dim_h,), 0.1)
    gamma2, beta2 = uni((dim_h,), 0.5, 1.5), nrm((dim_h,), 0.1)
    rmean2, rvar2 = nrm((dim_h,), 0.1), uni((dim_h,), 0.5, 1.5)
    w2b, b2b = nrm((dim_h, dim_h)), nrm((dim_h,), 0.1)
    # lin1: (2H -> 2H), lin2: (2H -> 2)
    w3, b3 = nrm((2 * dim_h, 2 * dim_h)), nrm((2 * dim_h,), 0.1)
    w4, b4 = nrm((2 * dim_h, num_classes)), nrm((num_classes,), 0.1)

    # Fold BN completely into the first Linear of each MLP (eval mode).
    s1, t1 = bn_fold(gamma1, beta1, rmean1, rvar1)
    s2, t2 = bn_fold(gamma2, beta2, rmean2, rvar2)
    w1a_f, b1a_f = w1a * s1[None, :], b1a * s1 + t1
    w2a_f, b2a_f = w2a * s2[None, :], b2a * s2 + t2

    # Glue: adjacency (with folded self term) / pooling, built padded once.
    a_pad = build_adjacency(edge_index, N_PAD, eps=eps_gin)
    pool_pad = build_pool_matrix(batch, G_PAD, N_PAD)
    a_bf = a_pad.astype(jnp.bfloat16)
    pool_bf = pool_pad.astype(jnp.bfloat16)
    x_pad = jnp.zeros((N_PAD, F_PAD), jnp.float32).at[:num_nodes, :f_in].set(x)
    x_bf = x_pad.astype(jnp.bfloat16)

    # Zero-padded parameters; layer weights in bf16 (f32 MXU accumulation).
    kp = dict(
        w1a=pad_mat(w1a_f, F_PAD, H_PAD).astype(jnp.bfloat16),
        b1a=pad_vec_row(b1a_f, H_PAD),
        w1b=pad_mat(w1b, H_PAD, H_PAD).astype(jnp.bfloat16),
        b1b=pad_vec_row(b1b, H_PAD),
        w2a=pad_mat(w2a_f, H_PAD, H_PAD).astype(jnp.bfloat16),
        b2a=pad_vec_row(b2a_f, H_PAD),
        w2b=pad_mat(w2b, H_PAD, H_PAD).astype(jnp.bfloat16),
        b2b=pad_vec_row(b2b, H_PAD),
        w3a=pad_mat(w3[:dim_h, :], H_PAD, H_PAD),   # rows acting on g1
        w3b=pad_mat(w3[dim_h:, :], H_PAD, H_PAD),   # rows acting on g2
        b3=pad_vec_row(b3, H_PAD),
        w4=pad_mat(w4, H_PAD, C_PAD), b4=pad_vec_row(b4, C_PAD),
    )

    out_pad = gin_forward(a_bf, x_bf, pool_bf, kp, num_classes=num_classes,
                          tm=TM, tk=TK, tn=TN)
    out_pad = jax.block_until_ready(out_pad)
    out = out_pad[:num_graphs]

    # Reference at real (unpadded) shapes with matching bf16 casts / folding.
    a_real = a_pad[:num_nodes, :num_nodes]
    pool_real = pool_pad[:num_graphs, :num_nodes]
    ref = reference_forward(a_real, x, pool_real,
                            w1a_f.astype(jnp.bfloat16), b1a_f,
                            w1b.astype(jnp.bfloat16), b1b,
                            w2a_f.astype(jnp.bfloat16), b2a_f,
                            w2b.astype(jnp.bfloat16), b2b,
                            w3, b3, w4, b4)

    assert out.shape == (num_graphs, num_classes)
    assert jnp.allclose(out, ref, atol=2e-2, rtol=2e-2), "mismatch vs reference"

    print("KERNEL_OK")
</pallas_src>

<mosaic_0001>
module attributes {stable_mosaic.version = 11 : i64} {
  func.func @gin_layer_kernel(%arg0: i32, %arg1: i32, %arg2: memref<256x256xbf16, #tpu.memory_space<vmem>>, %arg3: memref<256x128xbf16, #tpu.memory_space<vmem>>, %arg4: memref<128x128xbf16, #tpu.memory_space<vmem>>, %arg5: memref<1x128xf32, #tpu.memory_space<vmem>>, %arg6: memref<128x128xbf16, #tpu.memory_space<vmem>>, %arg7: memref<1x128xf32, #tpu.memory_space<vmem>>, %arg8: memref<256x128xbf16, #tpu.memory_space<vmem>>, %arg9: memref<256x128xf32, #tpu.memory_space<vmem>>) attributes {dimension_semantics = [#tpu.dimension_semantics<parallel>, #tpu.dimension_semantics<arbitrary>], iteration_bounds = array<i64: 2, 2>, scalar_prefetch = 0 : i64, scratch_operands = 1 : i64, tpu.core_type = #tpu.core_type<tc>, window_params = [{transform_indices = @transform_0, window_bounds = array<i64: 256, 256>}, {transform_indices = @transform_1, window_bounds = array<i64: 256, 128>}, {pipeline_mode = #tpu.pipeline_mode<synchronous>, transform_indices = @transform_2, window_bounds = array<i64: 128, 128>}, {pipeline_mode = #tpu.pipeline_mode<synchronous>, transform_indices = @transform_3, window_bounds = array<i64: 1, 128>}, {pipeline_mode = #tpu.pipeline_mode<synchronous>, transform_indices = @transform_4, window_bounds = array<i64: 128, 128>}, {pipeline_mode = #tpu.pipeline_mode<synchronous>, transform_indices = @transform_5, window_bounds = array<i64: 1, 128>}, {transform_indices = @transform_6, window_bounds = array<i64: 256, 128>}]} {
    %c0_i32 = arith.constant 0 : i32
    %0 = arith.cmpi eq, %arg1, %c0_i32 : i32
    %1 = arith.extui %0 : i1 to i32
    %c0_i32_0 = arith.constant 0 : i32
    %2 = arith.cmpi ne, %1, %c0_i32_0 : i32
    scf.if %2 {
      %cst_9 = arith.constant 0.000000e+00 : f32
      %12 = vector.broadcast %cst_9 : f32 to vector<256x128xf32>
      %c0_10 = arith.constant 0 : index
      %c0_11 = arith.constant 0 : index
      %13 = vector.load %arg9[%c0_10, %c0_11] : memref<256x128xf32, #tpu.memory_space<vmem>>, vector<256x128xf32>
      tpu.vector_store %arg9[%c0_10, %c0_11], %12 {strides = array<i32>} : memref<256x128xf32, #tpu.memory_space<vmem>>, vector<256x128xf32>,
    } else {
    }
    %c0 = arith.constant 0 : index
    %c0_1 = arith.constant 0 : index
    %3 = vector.load %arg9[%c0, %c0_1] : memref<256x128xf32, #tpu.memory_space<vmem>>, vector<256x128xf32>
    %c0_2 = arith.constant 0 : index
    %c0_3 = arith.constant 0 : index
    %4 = vector.load %arg2[%c0_2, %c0_3] : memref<256x256xbf16, #tpu.memory_space<vmem>>, vector<256x256xbf16>
    %c0_4 = arith.constant 0 : index
    %c0_5 = arith.constant 0 : index
    %5 = vector.load %arg3[%c0_4, %c0_5] : memref<256x128xbf16, #tpu.memory_space<vmem>>, vector<256x128xbf16>
    %cst = arith.constant dense<0.000000e+00> : vector<256x128xf32>
    %6 = tpu.matmul %4, %5, %cst {dimension_numbers = #tpu.dot_dimension_numbers<[1], [0], [0], [1], [0, 0, 1, 1], [], []>} : vector<256x256xbf16>, vector<256x128xbf16>, vector<256x128xf32> -> vector<256x128xf32>
    %7 = arith.addf %3, %6 : vector<256x128xf32>
    %c0_6 = arith.constant 0 : index
    %c0_7 = arith.constant 0 : index
    %8 = vector.load %arg9[%c0_6, %c0_7] : memref<256x128xf32, #tpu.memory_space<vmem>>, vector<256x128xf32>
    tpu.vector_store %arg9[%c0_6, %c0_7], %7 {strides = array<i32>} : memref<256x128xf32, #tpu.memory_space<vmem>>, vector<256x128xf32>,
    %c1_i32 = arith.constant 1 : i32
    %9 = arith.cmpi eq, %arg1, %c1_i32 : i32
    %10 = arith.extui %9 : i1 to i32
    %c0_i32_8 = arith.constant 0 : i32
    %11 = arith.cmpi ne, %10, %c0_i32_8 : i32
    scf.if %11 {
      %c0_9 = arith.constant 0 : index
      %c0_10 = arith.constant 0 : index
      %12 = vector.load %arg9[%c0_9, %c0_10] : memref<256x128xf32, #tpu.memory_space<vmem>>, vector<256x128xf32>
      %13 = arith.truncf %12 : vector<256x128xf32> to vector<256x128xbf16>
      %c0_11 = arith.constant 0 : index
      %c0_12 = arith.constant 0 : index
      %14 = vector.load %arg4[%c0_11, %c0_12] : memref<128x128xbf16, #tpu.memory_space<vmem>>, vector<128x128xbf16>
      %cst_13 = arith.constant dense<0.000000e+00> : vector<256x128xf32>
      %15 = tpu.matmul %13, %14, %cst_13 {dimension_numbers = #tpu.dot_dimension_numbers<[1], [0], [0], [1], [0, 0, 1, 1], [], []>} : vector<256x128xbf16>, vector<128x128xbf16>, vector<256x128xf32> -> vector<256x128xf32>
      %c0_14 = arith.constant 0 : index
      %c0_15 = arith.constant 0 : index
      %16 = vector.load %arg5[%c0_14, %c0_15] : memref<1x128xf32, #tpu.memory_space<vmem>>, vector<1x128xf32>
      %17 = vector.broadcast %16 : vector<1x128xf32> to vector<256x128xf32>
      %18 = arith.addf %15, %17 : vector<256x128xf32>
      %cst_16 = arith.constant 0.000000e+00 : f32
      %19 = vector.broadcast %cst_16 : f32 to vector<256x128xf32>
      %20 = arith.maximumf %18, %19 : vector<256x128xf32>
      %21 = arith.truncf %20 : vector<256x128xf32> to vector<256x128xbf16>
      %c0_17 = arith.constant 0 : index
      %c0_18 = arith.constant 0 : index
      %22 = vector.load %arg6[%c0_17, %c0_18] : memref<128x128xbf16, #tpu.memory_space<vmem>>, vector<128x128xbf16>
      %cst_19 = arith.constant dense<0.000000e+00> : vector<256x128xf32>
      %23 = tpu.matmul %21, %22, %cst_19 {dimension_numbers = #tpu.dot_dimension_numbers<[1], [0], [0], [1], [0, 0, 1, 1], [], []>} : vector<256x128xbf16>, vector<128x128xbf16>, vector<256x128xf32> -> vector<256x128xf32>
      %c0_20 = arith.constant 0 : index
      %c0_21 = arith.constant 0 : index
      %24 = vector.load %arg7[%c0_20, %c0_21] : memref<1x128xf32, #tpu.memory_space<vmem>>, vector<1x128xf32>
      %25 = vector.broadcast %24 : vector<1x128xf32> to vector<256x128xf32>
      %26 = arith.addf %23, %25 : vector<256x128xf32>
      %cst_22 = arith.constant 0.000000e+00 : f32
      %27 = vector.broadcast %cst_22 : f32 to vector<256x128xf32>
      %28 = arith.maximumf %26, %27 : vector<256x128xf32>
      %29 = arith.truncf %28 : vector<256x128xf32> to vector<256x128xbf16>
      %c0_23 = arith.constant 0 : index
      %c0_24 = arith.constant 0 : index
      %30 = vector.load %arg8[%c0_23, %c0_24] : memref<256x128xbf16, #tpu.memory_space<vmem>>, vector<256x128xbf16>
      tpu.vector_store %arg8[%c0_23, %c0_24], %29 {strides = array<i32>} : memref<256x128xbf16, #tpu.memory_space<vmem>>, vector<256x128xbf16>,
    } else {
    }
    return
  }
  func.func @transform_0(%arg0: i32, %arg1: i32) -> (i32, i32) {
    %c0_i32 = arith.constant 0 : i32
    return %arg0, %arg1 : i32, i32
  }
  func.func @transform_1(%arg0: i32, %arg1: i32) -> (i32, i32) {
    %c0_i32 = arith.constant 0 : i32
    %c0_i32_0 = arith.constant 0 : i32
    return %arg1, %c0_i32 : i32, i32
  }
  func.func @transform_2(%arg0: i32, %arg1: i32) -> (i32, i32) {
    %c0_i32 = arith.constant 0 : i32
    %c0_i32_0 = arith.constant 0 : i32
    %c0_i32_1 = arith.constant 0 : i32
    return %c0_i32, %c0_i32_0 : i32, i32
  }
  func.func @transform_3(%arg0: i32, %arg1: i32) -> (i32, i32) {
    %c0_i32 = arith.constant 0 : i32
    %c0_i32_0 = arith.constant 0 : i32
    %c0_i32_1 = arith.constant 0 : i32
    return %c0_i32, %c0_i32_0 : i32, i32
  }
  func.func @transform_4(%arg0: i32, %arg1: i32) -> (i32, i32) {
    %c0_i32 = arith.constant 0 : i32
    %c0_i32_0 = arith.constant 0 : i32
    %c0_i32_1 = arith.constant 0 : i32
    return %c0_i32, %c0_i32_0 : i32, i32
  }
  func.func @transform_5(%arg0: i32, %arg1: i32) -> (i32, i32) {
    %c0_i32 = arith.constant 0 : i32
    %c0_i32_0 = arith.constant 0 : i32
    %c0_i32_1 = arith.constant 0 : i32
    return %c0_i32, %c0_i32_0 : i32, i32
  }
  func.func @transform_6(%arg0: i32, %arg1: i32) -> (i32, i32) {
    %c0_i32 = arith.constant 0 : i32
    %c0_i32_0 = arith.constant 0 : i32
    return %arg0, %c0_i32 : i32, i32
  }
}

</mosaic_0001>

<bundles_post_ra>
// kernel: tpu_custom_call.1
= control target key start
LH: loop header
LB: loop body
LE: loop exit
PB: predicated region body
PF: predicated region fallthrough
CT: control target
= control target key end

     0   :  { %s3689_s0 = inlined_call_operand.hbm [shape: bf16[512,512], index: 0, kind: input, shape index: {}]   ;;  %s3690_s1 = inlined_call_operand.hbm [shape: bf16[512,128], index: 1, kind: input, shape index: {}]   ;;  %s3691_s2 = inlined_call_operand.hbm [shape: bf16[128,128], index: 2, kind: input, shape index: {}]   ;;  %s3692_s3 = inlined_call_operand.hbm [shape: f32[1,128], index: 3, kind: input, shape index: {}]   ;;  %s3693_s4 = inlined_call_operand.hbm [shape: bf16[128,128], index: 4, kind: input, shape index: {}]   ;;  %s3694_s5 = inlined_call_operand.hbm [shape: f32[1,128], index: 5, kind: input, shape index: {}]   ;;  %s3695_s6 = inlined_call_operand.hbm [shape: bf16[512,128], index: 6, kind: output, shape index: {}]  }
   0x1   :  { %3721 = sst [smem:[#allocation32_spill]] %s3689_s0 }
   0x2   :  { %3722 = sst [smem:[#allocation33_spill]] %s3691_s2 }
   0x3   :  { %3723 = sst [smem:[#allocation34_spill]] %s3692_s3 }
   0x4   :  { %3724 = sst [smem:[#allocation35_spill]] %s3693_s4 }
   0x5   :  { %3725 = sst [smem:[#allocation36_spill]] %s3694_s5 }
   0x6   :  { %3726 = sst [smem:[#allocation37_spill]] %s3695_s6 }
   0x7   :  { %11 = vsyncpa [#allocation4], 0 }
   0x8   :  { %13 = vsyncpa [#allocation4 + $0x1], 0 }
   0x9   :  { %14 = vsyncpa [#allocation7], 0 }
   0xa   :  { %16 = vsyncpa [#allocation7 + $0x1], 0 }
   0xb   :  { %17 = vsyncpa [#allocation10], 0 }
   0xc   :  { %18 = vsyncpa [#allocation13], 0 }
   0xd   :  { %19 = vsyncpa [#allocation5], 0 }
   0xe   :  { %21 = vsyncpa [#allocation5 + $0x1], 0  ;;  %s3094_s21 = smov 0   ;;  %s3096_s22 = smov 0  }
   0xf   :  { %s3098_s23 = smov 0   ;;  %s3100_s24 = smov 0  }
  0x10   :  { %s3102_s25 = smov 0   ;;  %s3104_s26 = smov 0  }
  0x11   :  { %s3106_s27 = smov 0   ;;  %s3108_s28 = smov 0  }
  0x12   :  { %s3110_s29 = smov 0   ;;  %s3112_s30 = smov 0  }
  0x13   :  { %s3114_s7 = smov 0   ;;  %s3116_s8 = smov 0  }
  0x14   :  { %s3118_s9 = smov 0   ;;  %s3120_s10 = smov 0  }
  0x15 LB: > { %3727 = sst [smem:[#allocation21_spill]] %s2990_s21  ;;  %s3161_s11 = sadd.s32 4294967295, %s3042_s10   ;;  %s3042_s10 = sphi %s3120_s10, %s27_s10   ;;  %s3038_s9 = sphi %s3118_s9, %s3784_s9   ;;  %s3034_s8 = sphi %s3116_s8, %s3795_s8   ;;  %s3030_s7 = sphi %s3114_s7, %s3782_s7   ;;  %s3026_s30 = sphi %s3112_s30, %s3794_s30   ;;  %s3022_s29 = sphi %s3110_s29, %s3793_s29   ;;  %s3018_s28 = sphi %s3108_s28, %s3792_s28   ;;  %s3014_s27 = sphi %s3106_s27, %s3791_s27   ;;  %s3010_s26 = sphi %s3104_s26, %s3790_s26   ;;  %s3006_s25 = sphi %s3102_s25, %s3789_s25   ;;  %s3002_s24 = sphi %s3100_s24, %s3788_s24   ;;  %s2998_s23 = sphi %s3098_s23, %s3787_s23   ;;  %s2994_s22 = sphi %s3096_s22, %s3786_s22   ;;  %s2990_s21 = sphi %s3094_s21, %s3785_s21  }
  0x16   : > { %3728 = sst [smem:[#allocation22_spill]] %s2994_s22  ;;  %s1918_s12 = sadd.s32 4294967294, %s3042_s10  }
  0x17   : > { %3729 = sst [smem:[#allocation23_spill]] %s3026_s30  ;;  %p61_p0 = scmp.ne.s32.totalorder %s3018_s28, %s3014_s27 }
  0x18   : > { %3730 = sst [smem:[#allocation24_spill]] %s3030_s7  ;;  %p3701_p1 = scmp.eq.s32.totalorder %s3161_s11, 0 }
  0x19   : > { %3731 = sst [smem:[#allocation25_spill]] %s3038_s9  ;;  %p87_p2 = scmp.ne.s32.totalorder %s3006_s25, %s3002_s24 }
  0x1a   : > { %3732 = sst [smem:[#allocation26_spill]] %s3161_s11  ;;  %p194_p3 = scmp.ne.s32.totalorder %s2998_s23, %s2994_s22 }
  0x1b   : > { %p3171_p4 = por %p3701_p1, %p61_p0  ;;  %p195_p5 = scmp.eq.s32.totalorder %s3161_s11, 3 }
  0x1c   : > { %p3178_p6 = por %p87_p2, %p3701_p1  ;;  %p200_p7 = scmp.ne.s32.totalorder %s2994_s22, %s2990_s21 }
  0x1d   : > { %s3733_s13 = scalar_select %p3171_p4, 1, 0 }
  0x1e   : > { %s3734_s14 = scalar_select %p3178_p6, 1, 0 }
  0x1f   : > { %p3184_p8 = por %p195_p5, %p194_p3  ;;  %p201_p9 = scmp.eq.s32.totalorder %s1918_s12, 3 }
  0x20   : > { %3735 = sst [smem:[#allocation27_spill]] %s3734_s14  ;;  %p1919_p10 = scmp.ge.s32.totalorder %s3042_s10, 1 }
  0x21   : > { %s3736_s15 = scalar_select %p3184_p8, 1, 0 }
  0x22   : > { %p208_p11 = scmp.lt.s32.totalorder %s3042_s10, 5  ;;  %p3190_p12 = por %p201_p9, %p200_p7 }
  0x23   : > { %3737 = sst [smem:[#allocation28_spill]] %s3736_s15  ;;  %s3044_s18 = smov [#allocation8]  }
  0x24   : > { %s3738_s16 = scalar_select %p3190_p12, 1, 0 }
  0x25   : > { %p3194_p13 = pnand %p1919_p10, %p208_p11  ;;  %s220_s19 = sshll.u32 %s3044_s18, 4  ;;  %s221_s19 = int_to_ptr.vmem [resolvable:$true] %s220_s19 }
  0x26   : > { %3739 = sst [smem:[#allocation29_spill]] %s3738_s16  ;;  %s3045_s24 = smov [#allocation9]  }
  0x27   : > { %s3740_s17 = scalar_select %p3194_p13, 1, 0 }
  0x28   : > { %p2470_p0 = pneg %p3194_p13  ;;  %s234_s27 = sshll.u32 %s3045_s24, 4  ;;  %s3206_s27 = int_to_ptr.vmem [resolvable:$true] %s234_s27 }
  0x29   : > { %s3742_s2 = sld [smem:[#allocation33_spill]] }
  0x2a   : > { %p3202_p2 = pnand %p2470_p0, %p3701_p1 }
  0x2c   : > { %p3216_p5 = pneg %p3202_p2 }
  0x2f   : > { %s2708_s21 = scalar_lea.hbm %s3742_s2, 1024 }
  0x30   : > { %p2709_p3 = scmp.ne.s32.totalorder %s3742_s2, %s2708_s21  ;;  %p2715_p10 = scmp.lt.u32.totalorder %s2708_s21, %s3742_s2 }
  0x32   : > { %p2711_p7 = pnand %p3216_p5, %p2709_p3 }
  0x34   : > { %p2712_p9 = pneg %p2711_p7 }
  0x36   : > { %p2717_p11 = pnand %p2715_p10, %p2712_p9 }
  0x38   : > { %2720 = shalt.err (!%p2717_p11)
}
  0x39   : > { %s2721_s16 = scalar_lea.vmem %s221_s19, 1024  ;;  %p2729_p8 = scmp.lt.s32.totalorder %s221_s19, %s221_s19 }
  0x3a   : > { %p2722_p0 = scmp.ne.s32.totalorder %s221_s19, %s2721_s16  ;;  %p2730_p6 = scmp.lt.s32.totalorder %s2721_s16, %s2721_s16 }
  0x3c   : > { %p2724_p1 = pnand %p2722_p0, %p3216_p5  ;;  %p2731_p4 = por %p2730_p6, %p2729_p8 }
  0x3e   : > { %p2725_p12 = pneg %p2724_p1 }
  0x40   : > { %p2732_p13 = pnand %p2731_p4, %p2725_p12 }
  0x42   : > { %2735 = shalt.err (!%p2732_p13)
}
  0x43   : > { %s3712_s6 = smov 64   ;;  %s3714_s15 = smov 4  }
  0x44   : > { %2473 = dma.hbm_to_vmem [thread:$0]  (!%p3202_p2), %s3742_s2, 1024, %s221_s19, [#allocation7], %s3712_s6, %s3712_s6, %s3714_s15  }
  0x45   : > { %s3744_s3 = sld [smem:[#allocation34_spill]] }
  0x4b   : > { %s2736_s30 = scalar_lea.hbm %s3744_s3, 16 }
  0x4c   : > { %p2737_p1 = scmp.ne.s32.totalorder %s3744_s3, %s2736_s30  ;;  %p2743_p8 = scmp.lt.u32.totalorder %s2736_s30, %s3744_s3 }
  0x4e   : > { %p2739_p4 = pnand %p2737_p1, %p3216_p5 }
  0x50   : > { %p2740_p6 = pneg %p2739_p4 }
  0x52   : > { %p2745_p12 = pnand %p2743_p8, %p2740_p6 }
  0x54   : > { %2748 = shalt.err (!%p2745_p12)
}
  0x55   : > { %s2749_s19 = scalar_lea.vmem %s3206_s27, 16  ;;  %s2756_s22 = scalar_lea.vmem %s3206_s27, 32 }
  0x56   : > { %p2750_p13 = scmp.ne.s32.totalorder %s3206_s27, %s2749_s19  ;;  %p2757_p9 = scmp.lt.s32.totalorder %s3206_s27, %s3206_s27 }
  0x57   : > { %p2758_p10 = scmp.lt.s32.totalorder %s2756_s22, %s2749_s19 }
  0x58   : > { %p2752_p3 = pnand %p2750_p13, %p3216_p5 }
  0x59   : > { %p2759_p11 = por %p2758_p10, %p2757_p9 }
  0x5a   : > { %p2753_p7 = pneg %p2752_p3 }
  0x5c   : > { %p2760_p0 = pnand %p2759_p11, %p2753_p7 }
  0x5e   : > { %2763 = shalt.err (!%p2760_p0)
}
  0x5f   : > { %2476 = dma.hbm_to_vmem [thread:$0]  (!%p3202_p2), %s3744_s3, 16, %s3206_s27, [#allocation10]  }
  0x60   : > { %s3048_s14 = smov [#allocation11]   ;;  %s3049_s7 = smov [#allocation12]  }
  0x61   : > { %s244_s21 = sshll.u32 %s3048_s14, 4  ;;  %s258_s12 = sshll.u32 %s3049_s7, 4  ;;  %s245_s21 = int_to_ptr.vmem [resolvable:$true] %s244_s21  ;;  %s259_s12 = int_to_ptr.vmem [resolvable:$true] %s258_s12 }
  0x62   : > { %s3745_s4 = sld [smem:[#allocation35_spill]] }
  0x68   : > { %s2764_s19 = scalar_lea.hbm %s3745_s4, 1024 }
  0x69   : > { %p2765_p1 = scmp.ne.s32.totalorder %s3745_s4, %s2764_s19  ;;  %p2771_p8 = scmp.lt.u32.totalorder %s2764_s19, %s3745_s4 }
  0x6b   : > { %p2767_p4 = pnand %p2765_p1, %p3216_p5 }
  0x6d   : > { %p2768_p6 = pneg %p2767_p4 }
  0x6f   : > { %p2773_p12 = pnand %p2771_p8, %p2768_p6 }
  0x71   : > { %2776 = shalt.err (!%p2773_p12)
}
  0x72   : > { %s2777_s27 = scalar_lea.vmem %s245_s21, 1024  ;;  %p2785_p9 = scmp.lt.s32.totalorder %s245_s21, %s245_s21 }
  0x73   : > { %p2778_p13 = scmp.ne.s32.totalorder %s245_s21, %s2777_s27  ;;  %p2786_p10 = scmp.lt.s32.totalorder %s2777_s27, %s2777_s27 }
  0x75   : > { %p2780_p3 = pnand %p2778_p13, %p3216_p5  ;;  %p2787_p11 = por %p2786_p10, %p2785_p9 }
  0x77   : > { %p2781_p7 = pneg %p2780_p3 }
  0x79   : > { %p2788_p0 = pnand %p2787_p11, %p2781_p7 }
  0x7b   : > { %2791 = shalt.err (!%p2788_p0)
}
  0x7c   : > { %s3746_s6 = smov 4   ;;  %s3747_s11 = smov 64  }
  0x7d   : > { %2479 = dma.hbm_to_vmem [thread:$0]  (!%p3202_p2), %s3745_s4, 1024, %s245_s21, [#allocation10], %s3747_s11, %s3747_s11, %s3746_s6  }
  0x7e   : > { %s3748_s5 = sld [smem:[#allocation36_spill]] }
  0x84   : > { %s2792_s16 = scalar_lea.hbm %s3748_s5, 16 }
  0x85   : > { %p2793_p1 = scmp.ne.s32.totalorder %s3748_s5, %s2792_s16  ;;  %p2799_p8 = scmp.lt.u32.totalorder %s2792_s16, %s3748_s5 }
  0x87   : > { %p2795_p4 = pnand %p2793_p1, %p3216_p5 }
  0x89   : > { %p2796_p6 = pneg %p2795_p4 }
  0x8b   : > { %p2801_p12 = pnand %p2799_p8, %p2796_p6 }
  0x8d   : > { %2804 = shalt.err (!%p2801_p12)
}
  0x8e   : > { %s2805_s15 = scalar_lea.vmem %s259_s12, 16  ;;  %s2812_s21 = scalar_lea.vmem %s259_s12, 32 }
  0x8f   : > { %p2806_p13 = scmp.ne.s32.totalorder %s259_s12, %s2805_s15  ;;  %p2813_p9 = scmp.lt.s32.totalorder %s259_s12, %s259_s12 }
  0x90   : > { %p2814_p10 = scmp.lt.s32.totalorder %s2812_s21, %s2805_s15 }
  0x91   : > { %p2808_p3 = pnand %p2806_p13, %p3216_p5 }
  0x92   : > { %p2815_p11 = por %p2814_p10, %p2813_p9 }
  0x93   : > { %p2809_p7 = pneg %p2808_p3 }
  0x95   : > { %p2816_p0 = pnand %p2815_p11, %p2809_p7 }
  0x97   : > { %2819 = shalt.err (!%p2816_p0)
}
  0x98   : > { %2482 = dma.hbm_to_vmem [thread:$0]  (!%p3202_p2), %s3748_s5, 16, %s259_s12, [#allocation13]  }
  0x99   : > { %s36_s18 = sadd.s32 1, %s3034_s8  ;;  %s39_s20 = sadd.s32 1, %s3038_s9 }
  0x9a   : > { %p37_p5 = scmp.ge.s32.totalorder %s36_s18, 2  ;;  %s48_s24 = sadd.s32 1, %s3022_s29 }
  0x9b   : > { %p55_p1 = scmp.ne.s32.totalorder %s3022_s29, %s3018_s28  ;;  %p3719_p4 = scmp.eq.s32.totalorder %s3042_s10, 0 }
  0x9c   : > { %s3797_s18 = smov (%p37_p5, %s36_s18), 0  ;;  %s3799_s20 = smov (!%p37_p5, %s39_s20), %s3038_s9 }
  0x9d   : > { %3749 = sst [smem:[#allocation30_spill]] %s3797_s18  ;;  %s3308_s16 = ssub.s32 %s3034_s8, %s3797_s18 }
  0x9e   : > { %p41_p2 = scmp.ge.s32.totalorder %s3799_s20, 2  ;;  %p72_p6 = scmp.eq.s32.totalorder %s3308_s16, 0 }
  0x9f   : > { %p3314_p8 = por %p3719_p4, %p55_p1  ;;  %s184_s19 = sadd.s32 1, %s2998_s23 }
  0xa0   : > { %s3801_s20 = smov (%p41_p2, %s3799_s20), 0  ;;  %p3718_p12 = scmp.lt.s32.totalorder %s3042_s10, 4 }
  0xa1   : > { %3751 = sst [smem:[#allocation31_spill]] %s3801_s20  ;;  %s269_s22 = sand.u32 1, %s3022_s29  }
  0xa2   : > { %s43_s30 = ssub.s32 %s3038_s9, %s3801_s20  ;;  %s1925_s15 = sshll.u32 %s269_s22, 8 }
  0xa3   : > { %s45_s27 = sor.u32 %s3308_s16, %s43_s30  ;;  %p182_p13 = scmp.eq.s32.totalorder %s43_s30, 0 }
  0xa4   : > { %p46_p3 = scmp.eq.s32.totalorder %s45_s27, 0  ;;  %s1927_s7 = sshll.u32 %s3034_s8, 1 }
  0xa5   : > { %s3327_s21 = scalar_select %p182_p13, %s2998_s23, %s184_s19  }
  0xa6   : > { %s3330_s14 = scalar_select %p46_p3, %s3022_s29, %s48_s24  }
  0xa7   : > { %s2046_s2 = sshll.u32 %s3038_s9, 7  ;;  %s273_s3 = scalar_lea.vmem [#allocation3], %s1925_s15 }
  0xa8   : > { %s283_s4 = sshll.u32 %s273_s3, 4  ;;  %s280_s5 = sadd.s32 %s2046_s2, %s1927_s7  ;;  %s3334_s4 = int_to_ptr.vmem [resolvable:$true] %s283_s4 }
  0xa9   : > { %s1929_s18 = sshll.u32 %s280_s5, 6  ;;  %p3340_p7 = pnand %p3718_p12, %p3314_p8 }
  0xaa   : > { %s3753_s0 = sld [smem:[#allocation32_spill]]  ;;  %s3349_s2 = scalar_lea.sflag [#allocation4], %s269_s22 }
  0xab   : > { %p2822_p10 = pneg %p3340_p7 }
  0xb0   : > { %s3347_s24 = scalar_lea.hbm %s3753_s0, %s1929_s18  ;;  %s2825_s19 = scalar_lea.hbm %s3753_s0, 16384 }
  0xb1   : > { %s2820_s3 = scalar_lea.hbm %s3347_s24, 4096  ;;  %p2826_p5 = scmp.lt.u32.totalorder %s3347_s24, %s3753_s0 }
  0xb2   : > { %p2821_p9 = scmp.ne.s32.totalorder %s3347_s24, %s2820_s3  ;;  %p2827_p1 = scmp.lt.u32.totalorder %s2825_s19, %s2820_s3 }
  0xb3   : > { %p2829_p8 = scmp.lt.u32.totalorder %s2820_s3, %s3347_s24 }
  0xb4   : > { %p2823_p11 = pnand %p2822_p10, %p2821_p9  ;;  %p2828_p2 = por %p2827_p1, %p2826_p5 }
  0xb6   : > { %p2824_p0 = pneg %p2823_p11  ;;  %p2830_p13 = por %p2829_p8, %p2828_p2 }
  0xb8   : > { %p2831_p3 = pnand %p2830_p13, %p2824_p0 }
  0xba   : > { %2834 = shalt.err (!%p2831_p3)
}
  0xbb   : > { %s2835_s22 = scalar_lea.vmem %s3334_s4, 4096  ;;  %s3050_s7 = smov [#allocation3]  }
  0xbc   : > { %p2836_p9 = scmp.ne.s32.totalorder %s3334_s4, %s2835_s22  ;;  %s2840_s30 = sshll.u32 %s3050_s7, 4  ;;  %s2841_s30 = int_to_ptr.vmem [resolvable:$false] %s2840_s30 }
  0xbd   : > { %s2842_s27 = scalar_lea.vmem %s2841_s30, 8192  ;;  %p2843_p4 = scmp.lt.s32.totalorder %s3334_s4, %s2841_s30 }
  0xbe   : > { %p2838_p11 = pnand %p2836_p9, %p2822_p10  ;;  %p2844_p5 = scmp.lt.s32.totalorder %s2842_s27, %s2835_s22 }
  0xc0   : > { %p2839_p12 = pneg %p2838_p11  ;;  %p2845_p1 = por %p2844_p5, %p2843_p4 }
  0xc2   : > { %p2846_p2 = pnand %p2845_p1, %p2839_p12 }
  0xc4   : > { %2849 = shalt.err (!%p2846_p2)
}
  0xc5   : > { %s3051_s3 = smov 256   ;;  %s3052_s5 = smov 128  }
  0xc6   : > { %s3053_s12 = smov 8   ;;  %s293_s19 = sand.u32 1, %s3042_s10  }
  0xc7   : > { %2486 = dma.hbm_to_vmem [thread:$0]  (!%p3340_p7), %s3347_s24, 4096, %s3334_s4, %s3349_s2, %s3051_s3, %s3052_s5, %s3053_s12  }
  0xc8   : > { %s74_s18 = sadd.s32 1, %s3010_s26  ;;  %p81_p4 = scmp.ne.s32.totalorder %s3010_s26, %s3006_s25 }
  0xc9   : > { %s3384_s15 = scalar_select %p72_p6, %s3010_s26, %s74_s18  }
  0xca   : > { %p3754_p12 = scmp.eq.s32.totalorder %s3042_s10, 0  ;;  %s295_s22 = sand.u32 1, %s3010_s26  }
  0xcb   : > { %s2047_s7 = sshll.u32 %s3034_s8, 11  ;;  %s1930_s30 = sshll.u32 %s295_s22, 7 }
  0xcc   : > { %p83_p10 = por %p81_p4, %p3754_p12  ;;  %s3393_s9 = scalar_lea.hbm %s3690_s1, %s2047_s7 }
  0xcd   : > { %p3755_p0 = scmp.lt.s32.totalorder %s3042_s10, 4  ;;  %s297_s20 = scalar_lea.vmem [#allocation6], %s1930_s30 }
  0xce   : > { %s304_s16 = sshll.u32 %s297_s20, 4  ;;  %s3403_s24 = scalar_lea.sflag [#allocation7], %s293_s19  ;;  %s3401_s16 = int_to_ptr.vmem [resolvable:$true] %s304_s16 }
  0xcf   : > { %p3397_p7 = pnand %p3755_p0, %p83_p10  ;;  %s2850_s0 = scalar_lea.hbm %s3393_s9, 2048 }
  0xd0   : > { %p2851_p6 = scmp.ne.s32.totalorder %s3393_s9, %s2850_s0  ;;  %s2855_s5 = scalar_lea.hbm %s3690_s1, 4096 }
  0xd1   : > { %p2852_p8 = pneg %p3397_p7  ;;  %p2856_p9 = scmp.lt.u32.totalorder %s3393_s9, %s3690_s1 }
  0xd2   : > { %p2857_p11 = scmp.lt.u32.totalorder %s2855_s5, %s2850_s0  ;;  %p2859_p1 = scmp.lt.u32.totalorder %s2850_s0, %s3393_s9 }
  0xd3   : > { %p2853_p13 = pnand %p2852_p8, %p2851_p6 }
  0xd4   : > { %p2858_p5 = por %p2857_p11, %p2856_p9 }
  0xd5   : > { %p2854_p3 = pneg %p2853_p13 }
  0xd6   : > { %p2860_p2 = por %p2859_p1, %p2858_p5 }
  0xd8   : > { %p2861_p4 = pnand %p2860_p2, %p2854_p3 }
  0xda   : > { %2864 = shalt.err (!%p2861_p4)
}
  0xdb   : > { %s2865_s19 = scalar_lea.vmem %s3401_s16, 2048  ;;  %s3054_s22 = smov [#allocation6]  }
  0xdc   : > { %p2866_p12 = scmp.ne.s32.totalorder %s3401_s16, %s2865_s19  ;;  %s2870_s7 = sshll.u32 %s3054_s22, 4  ;;  %s2871_s7 = int_to_ptr.vmem [resolvable:$false] %s2870_s7 }
  0xdd   : > { %s2872_s30 = scalar_lea.vmem %s2871_s7, 4096  ;;  %p2873_p6 = scmp.lt.s32.totalorder %s3401_s16, %s2871_s7 }
  0xde   : > { %p2868_p10 = pnand %p2866_p12, %p2852_p8  ;;  %p2874_p13 = scmp.lt.s32.totalorder %s2872_s30, %s2865_s19 }
  0xe0   : > { %p2869_p0 = pneg %p2868_p10  ;;  %p2875_p9 = por %p2874_p13, %p2873_p6 }
  0xe2   : > { %p2876_p11 = pnand %p2875_p9, %p2869_p0 }
  0xe4   : > { %2879 = shalt.err (!%p2876_p11)
}
  0xe5   : > { %2489 = dma.hbm_to_vmem [thread:$0]  (!%p3397_p7), %s3393_s9, 2048, %s3401_s16, %s3403_s24, %s3747_s11, %s3747_s11, %s3746_s6  }
  0xe6   : > { %p3757_p8 = scmp.ne.s32.totalorder %s3740_s17, 0 }
  0xe7   : > { %s318_s27 = sand.u32 (!%p3757_p8), 1, %s3018_s28   ;;  %p3758_p3 = scmp.ne.s32.totalorder (!%p3757_p8), %s3733_s13, 0 }
  0xe8   : > { %316 = sbr.rel (%p3757_p8) target bundleno = 1126 (0x466), region = 44  ;;  %s1934_s20 = sshll.u32 (!%p3757_p8), %s318_s27, 8 }
  0xe9   : > { %s319_s0 = scalar_lea.sflag (!%p3757_p8), [#allocation4], %s318_s27  ;;  %s3437_s2 = scalar_lea.vmem (!%p3757_p8), [#allocation3], %s1934_s20 }
  0xef   : > { %2965 = dma.done.wait (%p3758_p3), %s319_s0, 4096  }
  0xf0   : > { %2967 = vsyncadd (%p3758_p3), %s319_s0, 4294963200  ;;  %s3759_s4 = sld [smem:[#allocation26_spill]]  ;;  %s3760_s3 = sld [smem:[#allocation27_spill]] }
  0xf1   : > { %s329_s9 = sand.u32 1, %s3006_s25  }
  0xf2   : > { %s1935_s6 = sshll.u32 %s329_s9, 7 }
  0xf3   : > { %s3445_s11 = scalar_lea.vmem [#allocation6], %s1935_s6 }
  0xf6   : > { %s327_s5 = sand.u32 1, %s3759_s4   ;;  %p3761_p7 = scmp.ne.s32.totalorder %s3760_s3, 0 }
  0xf7   : > { %s328_s17 = scalar_lea.sflag [#allocation7], %s327_s5 }
  0xf8   : > { %2969 = dma.done.wait (%p3761_p7), %s328_s17, 2048  }
  0xf9   : > { %2971 = vsyncadd (%p3761_p7), %s328_s17, 4294965248  ;;  %p3762_p5 = scmp.eq.s32.totalorder %s3759_s4, 0 }
  0xfb   : > { %2973 = dma.done.wait (%p3762_p5), [#allocation7], 1024   ;;  %p3763_p1 = pmov %p3762_p5 }
  0xfd   : > { %2975 = vsyncadd (%p3763_p1), [#allocation7], 4294966272  ;;  %p3764_p2 = pmov %p3763_p1 }
  0xfe   : > { %p3765_p4 = pmov %p3763_p1 }
  0xff   : > { %2977 = dma.done.wait (%p3764_p2), [#allocation10], 1040  }
 0x100   : > { %2979 = vsyncadd (%p3765_p4), [#allocation10], 4294966256  ;;  %p3766_p12 = pmov %p3763_p1 }
 0x101   : > { %p3767_p10 = pmov %p3763_p1 }
 0x102   : > { %2981 = dma.done.wait (%p3766_p12), [#allocation13], 16  }
 0x103   : > { %2983 = vsyncadd (%p3767_p10), [#allocation13], 4294967280  ;;  %s3768_s13 = sld [smem:[#allocation22_spill]]  ;;  %s3769_s18 = sld [smem:[#allocation23_spill]] }
 0x109   : > { %s378_s16 = sand.u32 1, %s3768_s13   ;;  %p1941_p0 = scmp.ne.s32.totalorder %s3769_s18, 0 }
 0x10a   : > { %s1940_s24 = sshll.u32 %s378_s16, 7  ;;  %v3055_v0 = vmov (!%p1941_p0), 0.0  }
 0x10b   : > { %s3466_s12 = scalar_lea.vmem [#allocation14], %s1940_s24  ;;  %389 = sbr.rel (%p1941_p0) target bundleno = 283 (0x11b), region = 72  ;;  %390 = vst [vmem:[#allocation2] sm:$0xff] (!%p1941_p0), %v3055_v0  ;;  %391 = vst [vmem:[#allocation2 + $0x8] sm:$0xff] (!%p1941_p0), %v3055_v0 }
 0x10c   : > { %392 = vst [vmem:[#allocation2 + $0x10] sm:$0xff] (!%p1941_p0), %v3055_v0  ;;  %393 = vst [vmem:[#allocation2 + $0x18] sm:$0xff] (!%p1941_p0), %v3055_v0 }
 0x10d   : > { %394 = vst [vmem:[#allocation2 + $0x20] sm:$0xff] (!%p1941_p0), %v3055_v0  ;;  %395 = vst [vmem:[#allocation2 + $0x28] sm:$0xff] (!%p1941_p0), %v3055_v0 }
 0x10e   : > { %396 = vst [vmem:[#allocation2 + $0x30] sm:$0xff] (!%p1941_p0), %v3055_v0  ;;  %397 = vst [vmem:[#allocation2 + $0x38] sm:$0xff] (!%p1941_p0), %v3055_v0 }
 0x10f   : > { %398 = vst [vmem:[#allocation2 + $0x40] sm:$0xff] (!%p1941_p0), %v3055_v0  ;;  %399 = vst [vmem:[#allocation2 + $0x48] sm:$0xff] (!%p1941_p0), %v3055_v0 }
 0x110   : > { %400 = vst [vmem:[#allocation2 + $0x50] sm:$0xff] (!%p1941_p0), %v3055_v0  ;;  %401 = vst [vmem:[#allocation2 + $0x58] sm:$0xff] (!%p1941_p0), %v3055_v0 }
 0x111   : > { %402 = vst [vmem:[#allocation2 + $0x60] sm:$0xff] (!%p1941_p0), %v3055_v0  ;;  %403 = vst [vmem:[#allocation2 + $0x68] sm:$0xff] (!%p1941_p0), %v3055_v0 }
 0x112   : > { %404 = vst [vmem:[#allocation2 + $0x70] sm:$0xff] %v3055_v0  ;;  %405 = vst [vmem:[#allocation2 + $0x78] sm:$0xff] %v3055_v0 }
 0x113   : > { %406 = vst [vmem:[#allocation2 + $0x80] sm:$0xff] %v3055_v0  ;;  %407 = vst [vmem:[#allocation2 + $0x88] sm:$0xff] %v3055_v0 }
 0x114   : > { %408 = vst [vmem:[#allocation2 + $0x90] sm:$0xff] %v3055_v0  ;;  %409 = vst [vmem:[#allocation2 + $0x98] sm:$0xff] %v3055_v0 }
 0x115   : > { %410 = vst [vmem:[#allocation2 + $0xa0] sm:$0xff] %v3055_v0  ;;  %411 = vst [vmem:[#allocation2 + $0xa8] sm:$0xff] %v3055_v0 }
 0x116   : > { %412 = vst [vmem:[#allocation2 + $0xb0] sm:$0xff] %v3055_v0  ;;  %413 = vst [vmem:[#allocation2 + $0xb8] sm:$0xff] %v3055_v0 }
 0x117   : > { %414 = vst [vmem:[#allocation2 + $0xc0] sm:$0xff] %v3055_v0  ;;  %415 = vst [vmem:[#allocation2 + $0xc8] sm:$0xff] %v3055_v0 }
 0x118   : > { %416 = vst [vmem:[#allocation2 + $0xd0] sm:$0xff] %v3055_v0  ;;  %417 = vst [vmem:[#allocation2 + $0xd8] sm:$0xff] %v3055_v0 }
 0x119   : > { %418 = vst [vmem:[#allocation2 + $0xe0] sm:$0xff] %v3055_v0  ;;  %419 = vst [vmem:[#allocation2 + $0xe8] sm:$0xff] %v3055_v0 }
 0x11a   : > { %420 = vst [vmem:[#allocation2 + $0xf0] sm:$0xff] %v3055_v0  ;;  %421 = vst [vmem:[#allocation2 + $0xf8] sm:$0xff] %v3055_v0 }
 0x11b PF: > { %v2628_v1 = vld [vmem:[%s3445_s11 + $0x40] sm:$0xff]   ;;  %v2630_v3 = vld [vmem:[%s3445_s11 + $0x48] sm:$0xff]   ;;  %v2632_v5 = vld [vmem:[%s3445_s11 + $0x50] sm:$0xff]   ;;  %s3770_s19 = sld [smem:[#allocation23_spill]] }
 0x11c   : > { %v2629_v2 = vld [vmem:[%s3445_s11] sm:$0xff]   ;;  %2176 = vmatprep.subr.bf16.mxu0 %v2628_v1  ;;  %2432 = vmatprep.subr.bf16.mxu1 %v2628_v1  ;;  %v2631_v4 = vld [vmem:[%s3445_s11 + $0x8] sm:$0xff]   ;;  %v2633_v6 = vld [vmem:[%s3445_s11 + $0x10] sm:$0xff]  }
 0x11d   : > { %2177 = vmatpush3.bf16.msra.mxu0 %v2629_v2  ;;  %2440 = vmatpush3.bf16.msra.mxu1 %v2629_v2  ;;  %v2634_v7 = vld [vmem:[%s3445_s11 + $0x58] sm:$0xff]   ;;  %v2636_v9 = vld [vmem:[%s3445_s11 + $0x60] sm:$0xff]   ;;  %v2638_v11 = vld [vmem:[%s3445_s11 + $0x68] sm:$0xff]  }
 0x11e   : > { %2178 = vmatprep.subr.bf16.mxu0 %v2630_v3  ;;  %2433 = vmatprep.subr.bf16.mxu1 %v2630_v3  ;;  %v2635_v8 = vld [vmem:[%s3445_s11 + $0x18] sm:$0xff]   ;;  %v2637_v10 = vld [vmem:[%s3445_s11 + $0x20] sm:$0xff]   ;;  %v2639_v14 = vld [vmem:[%s3445_s11 + $0x28] sm:$0xff]  }
 0x11f   : > { %v2646_v12 = vld [vmem:[%s3437_s2 + $0x4] ss:$8 sps:$4 sm:$0xff]   ;;  %v2640_v15 = vld [vmem:[%s3445_s11 + $0x70] sm:$0xff]   ;;  %v2642_v17 = vld [vmem:[%s3445_s11 + $0x78] sm:$0xff]  }
 0x120   : > { %v2649_v13 = vld [vmem:[%s3437_s2 + $0x84] ss:$8 sps:$4 sm:$0xff]   ;;  %806 = vmatprep.mubr.bf16.mxu0 %v2646_v12  ;;  %v2641_v16 = vld [vmem:[%s3445_s11 + $0x30] sm:$0xff]   ;;  %v2643_v18 = vld [vmem:[%s3445_s11 + $0x38] sm:$0xff]  }
 0x121   : > { %2179 = vmatpush3.bf16.msra.mxu0 %v2631_v4  ;;  %2441 = vmatpush3.bf16.msra.mxu1 %v2631_v4  ;;  %v2644_v19 = vld [vmem:[%s3437_s2] ss:$8 sps:$4 sm:$0xff]   ;;  %v2650_v21 = vld [vmem:[%s3437_s2 + $0x14] ss:$8 sps:$4 sm:$0xff]   ;;  %v2654_v23 = vld [vmem:[%s3437_s2 + $0x10] ss:$8 sps:$4 sm:$0xff]  }
 0x122   : > { %2180 = vmatprep.subr.bf16.mxu0 %v2632_v5  ;;  %2434 = vmatprep.subr.bf16.mxu1 %v2632_v5  ;;  %v2647_v20 = vld [vmem:[%s3437_s2 + $0x80] ss:$8 sps:$4 sm:$0xff]   ;;  %v2652_v22 = vld [vmem:[%s3437_s2 + $0x94] ss:$8 sps:$4 sm:$0xff]   ;;  %v2655_v24 = vld [vmem:[%s3437_s2 + $0x90] ss:$8 sps:$4 sm:$0xff]  }
 0x123   : > { %870 = vmatprep.mubr.bf16.mxu1 %v2649_v13  ;;  %v2656_v25 = vld [vmem:[%s3437_s2 + $0x24] ss:$8 sps:$4 sm:$0xff]   ;;  %v2660_v27 = vld [vmem:[%s3437_s2 + $0x20] ss:$8 sps:$4 sm:$0xff]   ;;  %v2662_v29 = vld [vmem:[%s3437_s2 + $0x34] ss:$8 sps:$4 sm:$0xff]  }
 0x124   : > { %v2658_v26 = vld [vmem:[%s3437_s2 + $0xa4] ss:$8 sps:$4 sm:$0xff]   ;;  %v2661_v28 = vld [vmem:[%s3437_s2 + $0xa0] ss:$8 sps:$4 sm:$0xff]   ;;  %v2664_v30 = vld [vmem:[%s3437_s2 + $0xb4] ss:$8 sps:$4 sm:$0xff]  }
 0x125   : > { %2181 = vmatpush3.bf16.msra.mxu0 %v2633_v6  ;;  %2442 = vmatpush3.bf16.msra.mxu1 %v2633_v6  ;;  %v2666_v31 = vld [vmem:[%s3437_s2 + $0x30] ss:$8 sps:$4 sm:$0xff]   ;;  %v2668_v33 = vld [vmem:[%s3437_s2 + $0x44] ss:$8 sps:$4 sm:$0xff]   ;;  %v2672_v35 = vld [vmem:[%s3437_s2 + $0x40] ss:$8 sps:$4 sm:$0xff]  }
 0x126   : > { %2182 = vmatprep.subr.bf16.mxu0 %v2634_v7  ;;  %2435 = vmatprep.subr.bf16.mxu1 %v2634_v7  ;;  %v2667_v32 = vld [vmem:[%s3437_s2 + $0xb0] ss:$8 sps:$4 sm:$0xff]   ;;  %v2670_v34 = vld [vmem:[%s3437_s2 + $0xc4] ss:$8 sps:$4 sm:$0xff]   ;;  %v2673_v36 = vld [vmem:[%s3437_s2 + $0xc0] ss:$8 sps:$4 sm:$0xff]  }
 0x127   : > { %v2674_v37 = vld [vmem:[%s3437_s2 + $0x54] ss:$8 sps:$4 sm:$0xff]   ;;  %v2678_v39 = vld [vmem:[%s3437_s2 + $0x50] ss:$8 sps:$4 sm:$0xff]   ;;  %v2680_v41 = vld [vmem:[%s3437_s2 + $0x64] ss:$8 sps:$4 sm:$0xff]  }
 0x128   : > { %v2676_v38 = vld [vmem:[%s3437_s2 + $0xd4] ss:$8 sps:$4 sm:$0xff]   ;;  %v2679_v40 = vld [vmem:[%s3437_s2 + $0xd0] ss:$8 sps:$4 sm:$0xff]   ;;  %v2682_v42 = vld [vmem:[%s3437_s2 + $0xe4] ss:$8 sps:$4 sm:$0xff]  }
 0x129   : > { %2183 = vmatpush3.bf16.msra.mxu0 %v2635_v8  ;;  %2443 = vmatpush3.bf16.msra.mxu1 %v2635_v8  ;;  %v2684_v43 = vld [vmem:[%s3437_s2 + $0x60] ss:$8 sps:$4 sm:$0xff]   ;;  %v2686_v45 = vld [vmem:[%s3437_s2 + $0x74] ss:$8 sps:$4 sm:$0xff]   ;;  %v2690_v47 = vld [vmem:[%s3437_s2 + $0x70] ss:$8 sps:$4 sm:$0xff]  }
 0x12a   : > { %2184 = vmatprep.subr.bf16.mxu0 %v2636_v9  ;;  %2436 = vmatprep.subr.bf16.mxu1 %v2636_v9  ;;  %v2685_v44 = vld [vmem:[%s3437_s2 + $0xe0] ss:$8 sps:$4 sm:$0xff]   ;;  %v2688_v46 = vld [vmem:[%s3437_s2 + $0xf4] ss:$8 sps:$4 sm:$0xff]   ;;  %v2691_v48 = vld [vmem:[%s3437_s2 + $0xf0] ss:$8 sps:$4 sm:$0xff]  }
 0x12b   : > { %v422_v51 = vld [vmem:[#allocation2] sm:$0xff]  ;;  %v423_v59 = vld [vmem:[#allocation2 + $0x8] sm:$0xff]  ;;  %v424_v7 = vld [vmem:[#allocation2 + $0x10] sm:$0xff]  ;;  %p1990_p6 = scmp.ne.s32.totalorder %s3770_s19, 1 }
 0x12c   : > { %v438_v53 = vld [vmem:[#allocation2 + $0x80] sm:$0xff]  ;;  %v439_v61 = vld [vmem:[#allocation2 + $0x88] sm:$0xff]  ;;  %v440_v9 = vld [vmem:[#allocation2 + $0x90] sm:$0xff] }
 0x12d   : > { %2185 = vmatpush3.bf16.msra.mxu0 %v2637_v10  ;;  %2444 = vmatpush3.bf16.msra.mxu1 %v2637_v10 }
 0x12e   : > { %2186 = vmatprep.subr.bf16.mxu0 %v2638_v11  ;;  %2437 = vmatprep.subr.bf16.mxu1 %v2638_v11 }
 0x131   : > { %2187 = vmatpush3.bf16.msra.mxu0 %v2639_v14  ;;  %2445 = vmatpush3.bf16.msra.mxu1 %v2639_v14 }
 0x132   : > { %2188 = vmatprep.subr.bf16.mxu0 %v2640_v15  ;;  %2438 = vmatprep.subr.bf16.mxu1 %v2640_v15  ;;  %v425_v15 = vld [vmem:[#allocation2 + $0x18] sm:$0xff] }
 0x135   : > { %2189 = vmatpush3.bf16.msra.mxu0 %v2641_v16  ;;  %2446 = vmatpush3.bf16.msra.mxu1 %v2641_v16 }
 0x136   : > { %2190 = vmatprep.subr.bf16.mxu0 %v2642_v17  ;;  %2439 = vmatprep.subr.bf16.mxu1 %v2642_v17  ;;  %v441_v17 = vld [vmem:[#allocation2 + $0x98] sm:$0xff] }
 0x139   : > { %2191 = vmatpush3.bf16.msra.mxu0 %v2643_v18  ;;  %2447 = vmatpush3.bf16.msra.mxu1 %v2643_v18 }
 0x13c   : > { %807 = vmatmul.mubr.bf16.vlgmr.msra.gmra.mrb[0].mxu0 %v2644_v19  ;;  %871 = vmatmul.mubr.bf16.vlgmr.msra.gmra.mrb[0].mxu1 %v2647_v20 }
 0x13d   : > { %814 = vmatprep.mubr.bf16.mxu0 %v2650_v21  ;;  %878 = vmatprep.mubr.bf16.mxu1 %v2652_v22 }
 0x144   : > { %815 = vmatmul.mubr.bf16.gmra.mrb[4].mxu0 %v2654_v23  ;;  %879 = vmatmul.mubr.bf16.gmra.mrb[4].mxu1 %v2655_v24 }
 0x145   : > { %822 = vmatprep.mubr.bf16.mxu0 %v2656_v25  ;;  %886 = vmatprep.mubr.bf16.mxu1 %v2658_v26 }
 0x14c   : > { %823 = vmatmul.mubr.bf16.gmra.mrb[8].mxu0 %v2660_v27  ;;  %887 = vmatmul.mubr.bf16.gmra.mrb[8].mxu1 %v2661_v28  ;;  %v426_v27 = vld [vmem:[#allocation2 + $0x20] sm:$0xff] }
 0x14d   : > { %830 = vmatprep.mubr.bf16.mxu0 %v2662_v29  ;;  %894 = vmatprep.mubr.bf16.mxu1 %v2664_v30  ;;  %v442_v29 = vld [vmem:[#allocation2 + $0xa0] sm:$0xff] }
 0x154   : > { %831 = vmatmul.mubr.bf16.gmra.mrb[12].mxu0 %v2666_v31  ;;  %895 = vmatmul.mubr.bf16.gmra.mrb[12].mxu1 %v2667_v32 }
 0x155   : > { %838 = vmatprep.mubr.bf16.mxu0 %v2668_v33  ;;  %902 = vmatprep.mubr.bf16.mxu1 %v2670_v34 }
 0x15c   : > { %839 = vmatmul.mubr.bf16.gmra.mrb[16].mxu0 %v2672_v35  ;;  %903 = vmatmul.mubr.bf16.gmra.mrb[16].mxu1 %v2673_v36  ;;  %v427_v35 = vld [vmem:[#allocation2 + $0x28] sm:$0xff] }
 0x15d   : > { %846 = vmatprep.mubr.bf16.mxu0 %v2674_v37  ;;  %910 = vmatprep.mubr.bf16.mxu1 %v2676_v38  ;;  %v443_v37 = vld [vmem:[#allocation2 + $0xa8] sm:$0xff] }
 0x164   : > { %847 = vmatmul.mubr.bf16.gmra.mrb[20].mxu0 %v2678_v39  ;;  %911 = vmatmul.mubr.bf16.gmra.mrb[20].mxu1 %v2679_v40 }
 0x165   : > { %854 = vmatprep.mubr.bf16.mxu0 %v2680_v41  ;;  %918 = vmatprep.mubr.bf16.mxu1 %v2682_v42 }
 0x16c   : > { %855 = vmatmul.mubr.bf16.gmra.mrb[24].mxu0 %v2684_v43  ;;  %919 = vmatmul.mubr.bf16.gmra.mrb[24].mxu1 %v2685_v44 }
 0x16d   : > { %862 = vmatprep.mubr.bf16.mxu0 %v2686_v45  ;;  %926 = vmatprep.mubr.bf16.mxu1 %v2688_v46 }
 0x174   : > { %863 = vmatmul.mubr.bf16.gmra.mrb[28].mxu0 %v2690_v47  ;;  %927 = vmatmul.mubr.bf16.gmra.mrb[28].mxu1 %v2691_v48  ;;  %v428_v47 = vld [vmem:[#allocation2 + $0x30] sm:$0xff] }
 0x20f   : > { %v2192_v49 = vpop.f32.mrb[0].mxu0  ;;  %v2240_v50 = vpop.f32.mrb[0].mxu1 }
 0x210   : > { %v2193_v52 = vpop.f32.mrb[1].mxu0  ;;  %v2241_v54 = vpop.f32.mrb[1].mxu1 }
 0x211   : > { %v2194_v55 = vadd.f32 %v2193_v52, %v2192_v49  ;;  %v2242_v56 = vadd.f32 %v2241_v54, %v2240_v50  ;;  %v2195_v57 = vpop.f32.mrb[2].mxu0  ;;  %v2243_v58 = vpop.f32.mrb[2].mxu1  ;;  %v444_v49 = vld [vmem:[#allocation2 + $0xb0] sm:$0xff] }
 0x212   : > { %v2196_v60 = vpop.f32.mrb[3].mxu0  ;;  %v2244_v62 = vpop.f32.mrb[3].mxu1 }
 0x213   : > { %v935_v63 = vadd.f32 %v2194_v55, %v422_v51  ;;  %v951_v0 = vadd.f32 %v2242_v56, %v438_v53  ;;  %v2197_v1 = vadd.f32 %v2196_v60, %v2195_v57  ;;  %v2245_v2 = vadd.f32 %v2244_v62, %v2243_v58  ;;  %v429_v55 = vld [vmem:[#allocation2 + $0x38] sm:$0xff] }
 0x214   : > { %v445_v57 = vld [vmem:[#allocation2 + $0xb8] sm:$0xff] }
 0x215   : > { %967 = vst [vmem:[#allocation2] sm:$0xff] %v935_v63  ;;  %983 = vst [vmem:[#allocation2 + $0x80] sm:$0xff] %v951_v0  ;;  %v936_v3 = vadd.f32 %v2197_v1, %v423_v59  ;;  %v952_v4 = vadd.f32 %v2245_v2, %v439_v61 }
 0x217   : > { %968 = vst [vmem:[#allocation2 + $0x8] sm:$0xff] %v936_v3  ;;  %984 = vst [vmem:[#allocation2 + $0x88] sm:$0xff] %v952_v4  ;;  %v2198_v5 = vpop.f32.mrb[4].mxu0  ;;  %v2246_v6 = vpop.f32.mrb[4].mxu1  ;;  %v430_v3 = vld [vmem:[#allocation2 + $0x40] sm:$0xff] }
 0x218   : > { %v2199_v8 = vpop.f32.mrb[5].mxu0  ;;  %v2247_v10 = vpop.f32.mrb[5].mxu1 }
 0x219   : > { %v2200_v11 = vadd.f32 %v2199_v8, %v2198_v5  ;;  %v2248_v12 = vadd.f32 %v2247_v10, %v2246_v6  ;;  %v2201_v13 = vpop.f32.mrb[6].mxu0  ;;  %v2249_v14 = vpop.f32.mrb[6].mxu1  ;;  %v446_v5 = vld [vmem:[#allocation2 + $0xc0] sm:$0xff] }
 0x21a   : > { %v2202_v16 = vpop.f32.mrb[7].mxu0  ;;  %v2250_v18 = vpop.f32.mrb[7].mxu1 }
 0x21b   : > { %v937_v19 = vadd.f32 %v2200_v11, %v424_v7  ;;  %v953_v20 = vadd.f32 %v2248_v12, %v440_v9  ;;  %v2203_v21 = vadd.f32 %v2202_v16, %v2201_v13  ;;  %v2251_v22 = vadd.f32 %v2250_v18, %v2249_v14  ;;  %v431_v11 = vld [vmem:[#allocation2 + $0x48] sm:$0xff] }
 0x21c   : > { %v447_v13 = vld [vmem:[#allocation2 + $0xc8] sm:$0xff] }
 0x21d   : > { %969 = vst [vmem:[#allocation2 + $0x10] sm:$0xff] %v937_v19  ;;  %985 = vst [vmem:[#allocation2 + $0x90] sm:$0xff] %v953_v20  ;;  %v938_v23 = vadd.f32 %v2203_v21, %v425_v15  ;;  %v954_v24 = vadd.f32 %v2251_v22, %v441_v17 }
 0x21f   : > { %970 = vst [vmem:[#allocation2 + $0x18] sm:$0xff] %v938_v23  ;;  %986 = vst [vmem:[#allocation2 + $0x98] sm:$0xff] %v954_v24  ;;  %v2204_v25 = vpop.f32.mrb[8].mxu0  ;;  %v2252_v26 = vpop.f32.mrb[8].mxu1  ;;  %v432_v23 = vld [vmem:[#allocation2 + $0x50] sm:$0xff] }
 0x220   : > { %v2205_v28 = vpop.f32.mrb[9].mxu0  ;;  %v2253_v30 = vpop.f32.mrb[9].mxu1 }
 0x221   : > { %v2206_v31 = vadd.f32 %v2205_v28, %v2204_v25  ;;  %v2254_v32 = vadd.f32 %v2253_v30, %v2252_v26  ;;  %v2207_v33 = vpop.f32.mrb[10].mxu0  ;;  %v2255_v34 = vpop.f32.mrb[10].mxu1  ;;  %v448_v25 = vld [vmem:[#allocation2 + $0xd0] sm:$0xff] }
 0x222   : > { %v2208_v36 = vpop.f32.mrb[11].mxu0  ;;  %v2256_v38 = vpop.f32.mrb[11].mxu1 }
 0x223   : > { %v939_v39 = vadd.f32 %v2206_v31, %v426_v27  ;;  %v955_v40 = vadd.f32 %v2254_v32, %v442_v29  ;;  %v2209_v41 = vadd.f32 %v2208_v36, %v2207_v33  ;;  %v2257_v42 = vadd.f32 %v2256_v38, %v2255_v34  ;;  %v433_v31 = vld [vmem:[#allocation2 + $0x58] sm:$0xff] }
 0x224   : > { %v449_v33 = vld [vmem:[#allocation2 + $0xd8] sm:$0xff] }
 0x225   : > { %971 = vst [vmem:[#allocation2 + $0x20] sm:$0xff] %v939_v39  ;;  %987 = vst [vmem:[#allocation2 + $0xa0] sm:$0xff] %v955_v40  ;;  %v940_v43 = vadd.f32 %v2209_v41, %v427_v35  ;;  %v956_v44 = vadd.f32 %v2257_v42, %v443_v37 }
 0x227   : > { %972 = vst [vmem:[#allocation2 + $0x28] sm:$0xff] %v940_v43  ;;  %988 = vst [vmem:[#allocation2 + $0xa8] sm:$0xff] %v956_v44  ;;  %v2210_v45 = vpop.f32.mrb[12].mxu0  ;;  %v2258_v46 = vpop.f32.mrb[12].mxu1  ;;  %v434_v43 = vld [vmem:[#allocation2 + $0x60] sm:$0xff] }
 0x228   : > { %v2211_v48 = vpop.f32.mrb[13].mxu0  ;;  %v2259_v50 = vpop.f32.mrb[13].mxu1 }
 0x229   : > { %v2212_v51 = vadd.f32 %v2211_v48, %v2210_v45  ;;  %v2260_v52 = vadd.f32 %v2259_v50, %v2258_v46  ;;  %v2213_v53 = vpop.f32.mrb[14].mxu0  ;;  %v2261_v54 = vpop.f32.mrb[14].mxu1  ;;  %v450_v45 = vld [vmem:[#allocation2 + $0xe0] sm:$0xff] }
 0x22a   : > { %v2214_v56 = vpop.f32.mrb[15].mxu0  ;;  %v2262_v58 = vpop.f32.mrb[15].mxu1 }
 0x22b   : > { %v941_v59 = vadd.f32 %v2212_v51, %v428_v47  ;;  %v957_v60 = vadd.f32 %v2260_v52, %v444_v49  ;;  %v2215_v61 = vadd.f32 %v2214_v56, %v2213_v53  ;;  %v2263_v62 = vadd.f32 %v2262_v58, %v2261_v54  ;;  %v435_v51 = vld [vmem:[#allocation2 + $0x68] sm:$0xff] }
 0x22c   : > { %v451_v53 = vld [vmem:[#allocation2 + $0xe8] sm:$0xff] }
 0x22d   : > { %973 = vst [vmem:[#allocation2 + $0x30] sm:$0xff] %v941_v59  ;;  %989 = vst [vmem:[#allocation2 + $0xb0] sm:$0xff] %v957_v60  ;;  %v942_v63 = vadd.f32 %v2215_v61, %v429_v55  ;;  %v958_v0 = vadd.f32 %v2263_v62, %v445_v57 }
 0x22f   : > { %974 = vst [vmem:[#allocation2 + $0x38] sm:$0xff] %v942_v63  ;;  %990 = vst [vmem:[#allocation2 + $0xb8] sm:$0xff] %v958_v0  ;;  %v2216_v1 = vpop.f32.mrb[16].mxu0  ;;  %v2264_v2 = vpop.f32.mrb[16].mxu1  ;;  %v436_v63 = vld [vmem:[#allocation2 + $0x70] sm:$0xff] }
 0x230   : > { %v2217_v4 = vpop.f32.mrb[17].mxu0  ;;  %v2265_v6 = vpop.f32.mrb[17].mxu1 }
 0x231   : > { %v2218_v7 = vadd.f32 %v2217_v4, %v2216_v1  ;;  %v2266_v8 = vadd.f32 %v2265_v6, %v2264_v2  ;;  %v2219_v9 = vpop.f32.mrb[18].mxu0  ;;  %v2267_v10 = vpop.f32.mrb[18].mxu1  ;;  %v452_v1 = vld [vmem:[#allocation2 + $0xf0] sm:$0xff] }
 0x232   : > { %v2220_v12 = vpop.f32.mrb[19].mxu0  ;;  %v2268_v14 = vpop.f32.mrb[19].mxu1 }
 0x233   : > { %v943_v15 = vadd.f32 %v2218_v7, %v430_v3  ;;  %v959_v16 = vadd.f32 %v2266_v8, %v446_v5  ;;  %v2221_v17 = vadd.f32 %v2220_v12, %v2219_v9  ;;  %v2269_v18 = vadd.f32 %v2268_v14, %v2267_v10  ;;  %v437_v7 = vld [vmem:[#allocation2 + $0x78] sm:$0xff] }
 0x234   : > { %v453_v9 = vld [vmem:[#allocation2 + $0xf8] sm:$0xff] }
 0x235   : > { %975 = vst [vmem:[#allocation2 + $0x40] sm:$0xff] %v943_v15  ;;  %991 = vst [vmem:[#allocation2 + $0xc0] sm:$0xff] %v959_v16  ;;  %v944_v19 = vadd.f32 %v2221_v17, %v431_v11  ;;  %v960_v20 = vadd.f32 %v2269_v18, %v447_v13  ;;  %v2692_v17 = vld [vmem:[#allocation8] sm:$0xff] (!%p1990_p6)   ;;  %v2693_v18 = vld [vmem:[#allocation8 + $0x8] sm:$0xff] (!%p1990_p6)  }
 0x236   : > { %2336 = vmatprep.subr.bf16.mxu0 (!%p1990_p6), %v2692_v17 }
 0x237   : > { %976 = vst [vmem:[#allocation2 + $0x48] sm:$0xff] %v944_v19  ;;  %992 = vst [vmem:[#allocation2 + $0xc8] sm:$0xff] %v960_v20  ;;  %v2222_v21 = vpop.f32.mrb[20].mxu0  ;;  %v2270_v22 = vpop.f32.mrb[20].mxu1  ;;  %2337 = vmatpush3.bf16.msra.mxu0 (!%p1990_p6), %v2692_v17  ;;  %v2694_v19 = vld [vmem:[#allocation8 + $0x10] sm:$0xff] (!%p1990_p6)   ;;  %v2695_v20 = vld [vmem:[#allocation8 + $0x18] sm:$0xff] (!%p1990_p6)  }
 0x238   : > { %v2223_v24 = vpop.f32.mrb[21].mxu0  ;;  %v2271_v26 = vpop.f32.mrb[21].mxu1  ;;  %2338 = vmatprep.subr.bf16.mxu0 (!%p1990_p6), %v2693_v18  ;;  %v3518_v17 = vld [vmem:[#allocation9] ss:$0 sm:$0xff] (!%p1990_p6) }
 0x239   : > { %v2224_v27 = vadd.f32 %v2223_v24, %v2222_v21  ;;  %v2272_v28 = vadd.f32 %v2271_v26, %v2270_v22  ;;  %v2225_v29 = vpop.f32.mrb[22].mxu0  ;;  %v2273_v30 = vpop.f32.mrb[22].mxu1  ;;  %v1003_v21 = vld [vmem:[#allocation2] sm:$0xff] (!%p1990_p6)  ;;  %v1004_v22 = vld [vmem:[#allocation2 + $0x8] sm:$0xff] (!%p1990_p6)  ;;  %v2698_v26 = vld [vmem:[#allocation8 + $0x30] sm:$0xff] (!%p1990_p6)  }
 0x23a   : > { %v2226_v32 = vpop.f32.mrb[23].mxu0  ;;  %v2274_v34 = vpop.f32.mrb[23].mxu1  ;;  %v2696_v24 = vld [vmem:[#allocation8 + $0x20] sm:$0xff] (!%p1990_p6)  }
 0x23b   : > { %v945_v35 = vadd.f32 %v2224_v27, %v432_v23  ;;  %v961_v36 = vadd.f32 %v2272_v28, %v448_v25  ;;  %v2227_v37 = vadd.f32 %v2226_v32, %v2225_v29  ;;  %v2275_v38 = vadd.f32 %v2274_v34, %v2273_v30  ;;  %2339 = vmatpush3.bf16.msra.mxu0 (!%p1990_p6), %v2693_v18  ;;  %v2697_v25 = vld [vmem:[#allocation8 + $0x28] sm:$0xff] (!%p1990_p6)   ;;  %v2702_v29 = vld [vmem:[#allocation11 + $0x10] sm:$0xff] (!%p1990_p6)   ;;  %v1007_v34 = vld [vmem:[#allocation2 + $0x20] sm:$0xff] (!%p1990_p6) }
 0x23c   : > { %2340 = vmatprep.subr.bf16.mxu0 (!%p1990_p6), %v2694_v19  ;;  %v1035_v23 = vpack.c.bf16 (!%p1990_p6), %v1004_v22, %v1003_v21  ;;  %v2700_v27 = vld [vmem:[#allocation11] sm:$0xff] (!%p1990_p6)   ;;  %v2701_v28 = vld [vmem:[#allocation11 + $0x8] sm:$0xff] (!%p1990_p6)   ;;  %v2699_v30 = vld [vmem:[#allocation8 + $0x38] sm:$0xff] (!%p1990_p6)  }
 0x23d   : > { %977 = vst [vmem:[#allocation2 + $0x50] sm:$0xff] %v945_v35  ;;  %993 = vst [vmem:[#allocation2 + $0xd0] sm:$0xff] %v961_v36  ;;  %v946_v39 = vadd.f32 %v2227_v37, %v433_v31  ;;  %v962_v40 = vadd.f32 %v2275_v38, %v449_v33  ;;  %2384 = vmatprep.subr.bf16.mxu1 (!%p1990_p6), %v2700_v27  ;;  %v1005_v31 = vld [vmem:[#allocation2 + $0x10] sm:$0xff] (!%p1990_p6)  ;;  %v1006_v32 = vld [vmem:[#allocation2 + $0x18] sm:$0xff] (!%p1990_p6) }
 0x23e   : > { %2352 = vmatprep.mubr.bf16.mxu0 (!%p1990_p6), %v1035_v23  ;;  %2385 = vmatpush3.bf16.msra.mxu1 (!%p1990_p6), %v2700_v27  ;;  %v2703_v33 = vld [vmem:[#allocation11 + $0x18] sm:$0xff] (!%p1990_p6)   ;;  %v1008_v35 = vld [vmem:[#allocation2 + $0x28] sm:$0xff] (!%p1990_p6)  ;;  %v1036_v36 = vpack.c.bf16 (!%p1990_p6), %v1006_v32, %v1005_v31 }
 0x23f   : > { %978 = vst [vmem:[#allocation2 + $0x58] sm:$0xff] %v946_v39  ;;  %994 = vst [vmem:[#allocation2 + $0xd8] sm:$0xff] %v962_v40  ;;  %v2228_v41 = vpop.f32.mrb[24].mxu0  ;;  %v2276_v42 = vpop.f32.mrb[24].mxu1  ;;  %2341 = vmatpush3.bf16.msra.mxu0 (!%p1990_p6), %v2694_v19  ;;  %2386 = vmatprep.subr.bf16.mxu1 (!%p1990_p6), %v2701_v28  ;;  %v1037_v37 = vpack.c.bf16 (!%p1990_p6), %v1008_v35, %v1007_v34  ;;  %v2704_v38 = vld [vmem:[#allocation11 + $0x20] sm:$0xff] (!%p1990_p6)   ;;  %v1009_v39 = vld [vmem:[#allocation2 + $0x30] sm:$0xff] (!%p1990_p6) }
 0x240   : > { %v2229_v44 = vpop.f32.mrb[25].mxu0  ;;  %v2277_v46 = vpop.f32.mrb[25].mxu1  ;;  %2342 = vmatprep.subr.bf16.mxu0 (!%p1990_p6), %v2695_v20  ;;  %v1010_v40 = vld [vmem:[#allocation2 + $0x38] sm:$0xff] (!%p1990_p6) }
 0x241   : > { %v2230_v47 = vadd.f32 %v2229_v44, %v2228_v41  ;;  %v2278_v48 = vadd.f32 %v2277_v46, %v2276_v42  ;;  %v2231_v49 = vpop.f32.mrb[26].mxu0  ;;  %v2279_v50 = vpop.f32.mrb[26].mxu1  ;;  %v2705_v41 = vld [vmem:[#allocation11 + $0x28] sm:$0xff] (!%p1990_p6)   ;;  %v1011_v42 = vld [vmem:[#allocation2 + $0x40] sm:$0xff] (!%p1990_p6)  ;;  %v1038_v44 = vpack.c.bf16 (!%p1990_p6), %v1010_v40, %v1009_v39 }
 0x242   : > { %v2232_v52 = vpop.f32.mrb[27].mxu0  ;;  %v2280_v54 = vpop.f32.mrb[27].mxu1  ;;  %2387 = vmatpush3.bf16.msra.mxu1 (!%p1990_p6), %v2701_v28 }
 0x243   : > { %v947_v55 = vadd.f32 %v2230_v47, %v434_v43  ;;  %v963_v56 = vadd.f32 %v2278_v48, %v450_v45  ;;  %v2233_v57 = vadd.f32 %v2232_v52, %v2231_v49  ;;  %v2281_v58 = vadd.f32 %v2280_v54, %v2279_v50  ;;  %2343 = vmatpush3.bf16.msra.mxu0 (!%p1990_p6), %v2695_v20  ;;  %v1012_v43 = vld [vmem:[#allocation2 + $0x48] sm:$0xff] (!%p1990_p6)  ;;  %v1019_v54 = vld [vmem:[#allocation2 + $0x80] sm:$0xff] (!%p1990_p6) }
 0x244   : > { %2344 = vmatprep.subr.bf16.mxu0 (!%p1990_p6), %v2696_v24  ;;  %2388 = vmatprep.subr.bf16.mxu1 (!%p1990_p6), %v2702_v29  ;;  %v1039_v45 = vpack.c.bf16 (!%p1990_p6), %v1012_v43, %v1011_v42  ;;  %v1013_v46 = vld [vmem:[#allocation2 + $0x50] sm:$0xff] (!%p1990_p6) }
 0x245   : > { %979 = vst [vmem:[#allocation2 + $0x60] sm:$0xff] %v947_v55  ;;  %995 = vst [vmem:[#allocation2 + $0xe0] sm:$0xff] %v963_v56  ;;  %v948_v59 = vadd.f32 %v2233_v57, %v435_v51  ;;  %v964_v60 = vadd.f32 %v2281_v58, %v451_v53  ;;  %v1020_v55 = vld [vmem:[#allocation2 + $0x88] sm:$0xff] (!%p1990_p6)  ;;  %v1021_v58 = vld [vmem:[#allocation2 + $0x90] sm:$0xff] (!%p1990_p6) }
 0x246   : > { %2389 = vmatpush3.bf16.msra.mxu1 (!%p1990_p6), %v2702_v29  ;;  %v1014_v47 = vld [vmem:[#allocation2 + $0x58] sm:$0xff] (!%p1990_p6)  ;;  %v1043_v57 = vpack.c.bf16 (!%p1990_p6), %v1020_v55, %v1019_v54 }
 0x247   : > { %980 = vst [vmem:[#allocation2 + $0x68] sm:$0xff] %v948_v59  ;;  %996 = vst [vmem:[#allocation2 + $0xe8] sm:$0xff] %v964_v60  ;;  %v2234_v61 = vpop.f32.mrb[28].mxu0  ;;  %v2282_v62 = vpop.f32.mrb[28].mxu1  ;;  %2345 = vmatpush3.bf16.msra.mxu0 (!%p1990_p6), %v2696_v24  ;;  %2390 = vmatprep.subr.bf16.mxu1 (!%p1990_p6), %v2703_v33  ;;  %v1040_v50 = vpack.c.bf16 (!%p1990_p6), %v1014_v47, %v1013_v46  ;;  %v1022_v59 = vld [vmem:[#allocation2 + $0x98] sm:$0xff] (!%p1990_p6)  ;;  %v1023_v60 = vld [vmem:[#allocation2 + $0xa0] sm:$0xff] (!%p1990_p6) }
 0x248   : > { %v2235_v0 = vpop.f32.mrb[29].mxu0  ;;  %v2283_v2 = vpop.f32.mrb[29].mxu1  ;;  %2346 = vmatprep.subr.bf16.mxu0 (!%p1990_p6), %v2697_v25 }
 0x249   : > { %v2236_v3 = vadd.f32 %v2235_v0, %v2234_v61  ;;  %v2284_v4 = vadd.f32 %v2283_v2, %v2282_v62  ;;  %v2237_v5 = vpop.f32.mrb[30].mxu0  ;;  %v2285_v6 = vpop.f32.mrb[30].mxu1  ;;  %1002 = sbr.rel (%p1990_p6) target bundleno = 1098 (0x44a), region = 76  ;;  %v1024_v61 = vld [vmem:[#allocation2 + $0xa8] sm:$0xff] (!%p1990_p6)  ;;  %v1044_v62 = vpack.c.bf16 (!%p1990_p6), %v1022_v59, %v1021_v58  ;;  %v1025_v0 = vld [vmem:[#allocation2 + $0xb0] sm:$0xff] (!%p1990_p6)  ;;  %v1027_v2 = vld [vmem:[#allocation2 + $0xc0] sm:$0xff] (!%p1990_p6) }
 0x24a   : > { %v2238_v8 = vpop.f32.mrb[31].mxu0  ;;  %v2286_v10 = vpop.f32.mrb[31].mxu1  ;;  %2391 = vmatpush3.bf16.msra.mxu1 (!%p1990_p6), %v2703_v33 }
 0x24b   : > { %v949_v11 = vadd.f32 %v2236_v3, %v436_v63  ;;  %v965_v12 = vadd.f32 %v2284_v4, %v452_v1  ;;  %v2239_v13 = vadd.f32 %v2238_v8, %v2237_v5  ;;  %v2287_v14 = vadd.f32 %v2286_v10, %v2285_v6  ;;  %2347 = vmatpush3.bf16.msra.mxu0 (!%p1990_p6), %v2697_v25  ;;  %v1026_v1 = vld [vmem:[#allocation2 + $0xb8] sm:$0xff] (!%p1990_p6)  ;;  %v1028_v3 = vld [vmem:[#allocation2 + $0xc8] sm:$0xff] (!%p1990_p6)  ;;  %v1029_v6 = vld [vmem:[#allocation2 + $0xd0] sm:$0xff] (!%p1990_p6) }
 0x24c   : > { %2348 = vmatprep.subr.bf16.mxu0 (!%p1990_p6), %v2698_v26  ;;  %2392 = vmatprep.subr.bf16.mxu1 (!%p1990_p6), %v2704_v38  ;;  %v1015_v48 = vld [vmem:[#allocation2 + $0x60] sm:$0xff] (!%p1990_p6)  ;;  %v1045_v63 = vpack.c.bf16 (!%p1990_p6), %v1024_v61, %v1023_v60  ;;  %v1046_v4 = vpack.c.bf16 (!%p1990_p6), %v1026_v1, %v1025_v0  ;;  %v1047_v5 = vpack.c.bf16 (!%p1990_p6), %v1028_v3, %v1027_v2 }
 0x24d   : > { %981 = vst [vmem:[#allocation2 + $0x70] sm:$0xff] %v949_v11  ;;  %997 = vst [vmem:[#allocation2 + $0xf0] sm:$0xff] %v965_v12  ;;  %v950_v15 = vadd.f32 %v2239_v13, %v437_v7  ;;  %v966_v16 = vadd.f32 %v2287_v14, %v453_v9  ;;  %v1030_v7 = vld [vmem:[#allocation2 + $0xd8] sm:$0xff] (!%p1990_p6)  ;;  %v1031_v8 = vld [vmem:[#allocation2 + $0xe0] sm:$0xff] (!%p1990_p6) }
 0x24e   : > { %2393 = vmatpush3.bf16.msra.mxu1 (!%p1990_p6), %v2704_v38  ;;  %v1016_v49 = vld [vmem:[#allocation2 + $0x68] sm:$0xff] (!%p1990_p6)  ;;  %v1048_v10 = vpack.c.bf16 (!%p1990_p6), %v1030_v7, %v1029_v6 }
 0x24f   : > { %982 = vst [vmem:[#allocation2 + $0x78] sm:$0xff] %v950_v15  ;;  %998 = vst [vmem:[#allocation2 + $0xf8] sm:$0xff] %v966_v16  ;;  %2349 = vmatpush3.bf16.msra.mxu0 (!%p1990_p6), %v2698_v26  ;;  %2394 = vmatprep.subr.bf16.mxu1 (!%p1990_p6), %v2705_v41  ;;  %v1041_v51 = vpack.c.bf16 (!%p1990_p6), %v1016_v49, %v1015_v48  ;;  %v1032_v9 = vld [vmem:[#allocation2 + $0xe8] sm:$0xff] (!%p1990_p6)  ;;  %v2706_v15 = vld [vmem:[#allocation11 + $0x30] sm:$0xff] (!%p1990_p6)  }
 0x250   : > { %2350 = vmatprep.subr.bf16.mxu0 %v2699_v30  ;;  %v1049_v11 = vpack.c.bf16 %v1032_v9, %v1031_v8  ;;  %v2707_v16 = vld [vmem:[#allocation11 + $0x38] sm:$0xff]  }
 0x252   : > { %2395 = vmatpush3.bf16.msra.mxu1 %v2705_v41 }
 0x253   : > { %2351 = vmatpush3.bf16.msra.mxu0 %v2699_v30  ;;  %2396 = vmatprep.subr.bf16.mxu1 %v2706_v15 }
 0x254   : > { %v1017_v52 = vld [vmem:[#allocation2 + $0x70] sm:$0xff] }
 0x255   : > { %v1033_v12 = vld [vmem:[#allocation2 + $0xf0] sm:$0xff] }
 0x256   : > { %2353 = vmatmul.mubr.bf16.vlgmr.msra.gmra.mrb[0].mxu0 %v1036_v36  ;;  %v1018_v53 = vld [vmem:[#allocation2 + $0x78] sm:$0xff]  ;;  %2397 = vmatpush3.bf16.msra.mxu1 %v2706_v15 }
 0x257   : > { %2356 = vmatprep.mubr.bf16.mxu0 %v1037_v37  ;;  %v1042_v56 = vpack.c.bf16 %v1018_v53, %v1017_v52  ;;  %v1034_v13 = vld [vmem:[#allocation2 + $0xf8] sm:$0xff]  ;;  %2398 = vmatprep.subr.bf16.mxu1 %v2707_v16 }
 0x258   : > { %v1050_v14 = vpack.c.bf16 %v1034_v13, %v1033_v12 }
 0x25a   : > { %2399 = vmatpush3.bf16.msra.mxu1 %v2707_v16 }
 0x25e   : > { %2357 = vmatmul.mubr.bf16.gmra.mrb[4].mxu0 %v1038_v44 }
 0x25f   : > { %2360 = vmatprep.mubr.bf16.mxu0 %v1039_v45 }
 0x266   : > { %2361 = vmatmul.mubr.bf16.gmra.mrb[8].mxu0 %v1040_v50 }
 0x267   : > { %2364 = vmatprep.mubr.bf16.mxu0 %v1041_v51 }
 0x26e   : > { %2365 = vmatmul.mubr.bf16.gmra.mrb[12].mxu0 %v1042_v56 }
 0x26f   : > { %2368 = vmatprep.mubr.bf16.mxu0 %v1043_v57 }
 0x276   : > { %2369 = vmatmul.mubr.bf16.gmra.mrb[16].mxu0 %v1044_v62 }
 0x277   : > { %2372 = vmatprep.mubr.bf16.mxu0 %v1045_v63 }
 0x27e   : > { %2373 = vmatmul.mubr.bf16.gmra.mrb[20].mxu0 %v1046_v4 }
 0x27f   : > { %2376 = vmatprep.mubr.bf16.mxu0 %v1047_v5 }
 0x286   : > { %2377 = vmatmul.mubr.bf16.gmra.mrb[24].mxu0 %v1048_v10 }
 0x287   : > { %2380 = vmatprep.mubr.bf16.mxu0 %v1049_v11 }
 0x28e   : > { %2381 = vmatmul.mubr.bf16.gmra.mrb[28].mxu0 %v1050_v14 }
 0x329   : > { %v2354_v18 = vpop.f32.mrb[0].mxu0 }
 0x32a   : > { %v1165_v19 = vadd.f32 %v2354_v18, %v3518_v17  ;;  %v1156_v20 = vpop.f32.mrb[1].mxu0 }
 0x32b   : > { %v1157_v21 = vadd.f32 %v3518_v17, %v1156_v20  ;;  %v2355_v22 = vpop.f32.mrb[2].mxu0 }
 0x32c   : > { %v1168_v23 = vadd.f32 %v2355_v22, %v3518_v17  ;;  %v1159_v24 = vpop.f32.mrb[3].mxu0  ;;  %v1285_v26 = vmax.f32 %v1165_v19, 0.0 }
 0x32d   : > { %v1160_v25 = vadd.f32 %v3518_v17, %v1159_v24  ;;  %v1283_v28 = vmax.f32 %v1157_v21, 0.0 }
 0x32e   : > { %v1286_v27 = vmax.f32 %v1168_v23, 0.0 }
 0x32f   : > { %v1284_v29 = vmax.f32 %v1160_v25, 0.0 }
 0x330   : > { %v1316_v30 = vpack.c.bf16 %v1286_v27, %v1285_v26 }
 0x331   : > { %v2358_v31 = vpop.f32.mrb[4].mxu0  ;;  %v1315_v32 = vpack.c.bf16 %v1284_v29, %v1283_v28 }
 0x332   : > { %v1181_v33 = vadd.f32 %v2358_v31, %v3518_v17  ;;  %v1172_v34 = vpop.f32.mrb[5].mxu0 }
 0x333   : > { %v1173_v35 = vadd.f32 %v3518_v17, %v1172_v34  ;;  %v2359_v36 = vpop.f32.mrb[6].mxu0  ;;  %2400 = vmatprep.mubr.bf16.mxu1 %v1315_v32 }
 0x334   : > { %v1184_v37 = vadd.f32 %v2359_v36, %v3518_v17  ;;  %v1175_v38 = vpop.f32.mrb[7].mxu0  ;;  %2401 = vmatmul.mubr.bf16.vlgmr.msra.gmra.mrb[0].mxu1 %v1316_v30  ;;  %v1289_v40 = vmax.f32 %v1181_v33, 0.0 }
 0x335   : > { %v1176_v39 = vadd.f32 %v3518_v17, %v1175_v38  ;;  %v1287_v42 = vmax.f32 %v1173_v35, 0.0 }
 0x336   : > { %v1290_v41 = vmax.f32 %v1184_v37, 0.0 }
 0x337   : > { %v1288_v43 = vmax.f32 %v1176_v39, 0.0 }
 0x338   : > { %v1318_v44 = vpack.c.bf16 %v1290_v41, %v1289_v40 }
 0x339   : > { %v1317_v45 = vpack.c.bf16 %v1288_v43, %v1287_v42  ;;  %v2362_v46 = vpop.f32.mrb[8].mxu0 }
 0x33a   : > { %v1197_v47 = vadd.f32 %v2362_v46, %v3518_v17  ;;  %v1188_v48 = vpop.f32.mrb[9].mxu0 }
 0x33b   : > { %v1189_v49 = vadd.f32 %v3518_v17, %v1188_v48  ;;  %v2363_v50 = vpop.f32.mrb[10].mxu0  ;;  %2404 = vmatprep.mubr.bf16.mxu1 %v1317_v45 }
 0x33c   : > { %v1200_v51 = vadd.f32 %v2363_v50, %v3518_v17  ;;  %v1191_v52 = vpop.f32.mrb[11].mxu0  ;;  %2405 = vmatmul.mubr.bf16.gmra.mrb[4].mxu1 %v1318_v44  ;;  %v1293_v54 = vmax.f32 %v1197_v47, 0.0 }
 0x33d   : > { %v1192_v53 = vadd.f32 %v3518_v17, %v1191_v52  ;;  %v1291_v56 = vmax.f32 %v1189_v49, 0.0 }
 0x33e   : > { %v1294_v55 = vmax.f32 %v1200_v51, 0.0 }
 0x33f   : > { %v1292_v57 = vmax.f32 %v1192_v53, 0.0 }
 0x340   : > { %v1320_v58 = vpack.c.bf16 %v1294_v55, %v1293_v54 }
 0x341   : > { %v1319_v59 = vpack.c.bf16 %v1292_v57, %v1291_v56  ;;  %v2366_v60 = vpop.f32.mrb[12].mxu0 }
 0x342   : > { %v1213_v61 = vadd.f32 %v2366_v60, %v3518_v17  ;;  %v1204_v62 = vpop.f32.mrb[13].mxu0 }
 0x343   : > { %v1205_v63 = vadd.f32 %v3518_v17, %v1204_v62  ;;  %v2367_v0 = vpop.f32.mrb[14].mxu0  ;;  %2408 = vmatprep.mubr.bf16.mxu1 %v1319_v59 }
 0x344   : > { %v1216_v1 = vadd.f32 %v2367_v0, %v3518_v17  ;;  %v1207_v2 = vpop.f32.mrb[15].mxu0  ;;  %2409 = vmatmul.mubr.bf16.gmra.mrb[8].mxu1 %v1320_v58  ;;  %v1297_v4 = vmax.f32 %v1213_v61, 0.0 }
 0x345   : > { %v1208_v3 = vadd.f32 %v3518_v17, %v1207_v2  ;;  %v1295_v6 = vmax.f32 %v1205_v63, 0.0 }
 0x346   : > { %v1298_v5 = vmax.f32 %v1216_v1, 0.0 }
 0x347   : > { %v1296_v7 = vmax.f32 %v1208_v3, 0.0  ;;  %v3552_v3 = vld [vmem:[#allocation12] ss:$0 sm:$0xff] }
 0x348   : > { %v1322_v8 = vpack.c.bf16 %v1298_v5, %v1297_v4 }
 0x349   : > { %v1321_v9 = vpack.c.bf16 %v1296_v7, %v1295_v6  ;;  %v2370_v10 = vpop.f32.mrb[16].mxu0 }
 0x34a   : > { %v1229_v11 = vadd.f32 %v2370_v10, %v3518_v17  ;;  %v1220_v12 = vpop.f32.mrb[17].mxu0 }
 0x34b   : > { %v1221_v13 = vadd.f32 %v3518_v17, %v1220_v12  ;;  %v2371_v14 = vpop.f32.mrb[18].mxu0  ;;  %2412 = vmatprep.mubr.bf16.mxu1 %v1321_v9 }
 0x34c   : > { %v1232_v15 = vadd.f32 %v2371_v14, %v3518_v17  ;;  %v1223_v16 = vpop.f32.mrb[19].mxu0  ;;  %2413 = vmatmul.mubr.bf16.gmra.mrb[12].mxu1 %v1322_v8  ;;  %v1301_v19 = vmax.f32 %v1229_v11, 0.0 }
 0x34d   : > { %v1224_v18 = vadd.f32 %v3518_v17, %v1223_v16  ;;  %v1299_v21 = vmax.f32 %v1221_v13, 0.0 }
 0x34e   : > { %v1302_v20 = vmax.f32 %v1232_v15, 0.0 }
 0x34f   : > { %v1300_v22 = vmax.f32 %v1224_v18, 0.0 }
 0x350   : > { %v1324_v23 = vpack.c.bf16 %v1302_v20, %v1301_v19 }
 0x351   : > { %v1323_v24 = vpack.c.bf16 %v1300_v22, %v1299_v21  ;;  %v2374_v25 = vpop.f32.mrb[20].mxu0 }
 0x352   : > { %v1245_v26 = vadd.f32 %v2374_v25, %v3518_v17  ;;  %v1236_v27 = vpop.f32.mrb[21].mxu0 }
 0x353   : > { %v1237_v28 = vadd.f32 %v3518_v17, %v1236_v27  ;;  %v2375_v29 = vpop.f32.mrb[22].mxu0  ;;  %2416 = vmatprep.mubr.bf16.mxu1 %v1323_v24 }
 0x354   : > { %v1248_v30 = vadd.f32 %v2375_v29, %v3518_v17  ;;  %v1239_v31 = vpop.f32.mrb[23].mxu0  ;;  %2417 = vmatmul.mubr.bf16.gmra.mrb[16].mxu1 %v1324_v23  ;;  %v1305_v33 = vmax.f32 %v1245_v26, 0.0 }
 0x355   : > { %v1240_v32 = vadd.f32 %v3518_v17, %v1239_v31  ;;  %v1303_v35 = vmax.f32 %v1237_v28, 0.0 }
 0x356   : > { %v1306_v34 = vmax.f32 %v1248_v30, 0.0 }
 0x357   : > { %v1304_v36 = vmax.f32 %v1240_v32, 0.0 }
 0x358   : > { %v1326_v37 = vpack.c.bf16 %v1306_v34, %v1305_v33 }
 0x359   : > { %v1325_v38 = vpack.c.bf16 %v1304_v36, %v1303_v35  ;;  %v2378_v39 = vpop.f32.mrb[24].mxu0 }
 0x35a   : > { %v1261_v40 = vadd.f32 %v2378_v39, %v3518_v17  ;;  %v1252_v41 = vpop.f32.mrb[25].mxu0 }
 0x35b   : > { %v1253_v42 = vadd.f32 %v3518_v17, %v1252_v41  ;;  %v2379_v43 = vpop.f32.mrb[26].mxu0  ;;  %2420 = vmatprep.mubr.bf16.mxu1 %v1325_v38 }
 0x35c   : > { %v1264_v44 = vadd.f32 %v2379_v43, %v3518_v17  ;;  %v1255_v45 = vpop.f32.mrb[27].mxu0  ;;  %2421 = vmatmul.mubr.bf16.gmra.mrb[20].mxu1 %v1326_v37  ;;  %v1309_v47 = vmax.f32 %v1261_v40, 0.0 }
 0x35d   : > { %v1256_v46 = vadd.f32 %v3518_v17, %v1255_v45  ;;  %v1307_v49 = vmax.f32 %v1253_v42, 0.0 }
 0x35e   : > { %v1310_v48 = vmax.f32 %v1264_v44, 0.0 }
 0x35f   : > { %v1308_v50 = vmax.f32 %v1256_v46, 0.0 }
 0x360   : > { %v1328_v51 = vpack.c.bf16 %v1310_v48, %v1309_v47 }
 0x361   : > { %v1327_v52 = vpack.c.bf16 %v1308_v50, %v1307_v49  ;;  %v2382_v53 = vpop.f32.mrb[28].mxu0 }
 0x362   : > { %v1277_v54 = vadd.f32 %v2382_v53, %v3518_v17  ;;  %v1268_v55 = vpop.f32.mrb[29].mxu0 }
 0x363   : > { %v1269_v56 = vadd.f32 %v3518_v17, %v1268_v55  ;;  %v2383_v57 = vpop.f32.mrb[30].mxu0  ;;  %2424 = vmatprep.mubr.bf16.mxu1 %v1327_v52 }
 0x364   : > { %v1280_v58 = vadd.f32 %v2383_v57, %v3518_v17  ;;  %v1271_v59 = vpop.f32.mrb[31].mxu0  ;;  %2425 = vmatmul.mubr.bf16.gmra.mrb[24].mxu1 %v1328_v51  ;;  %v1313_v61 = vmax.f32 %v1277_v54, 0.0 }
 0x365   : > { %v1272_v60 = vadd.f32 %v3518_v17, %v1271_v59  ;;  %v1311_v63 = vmax.f32 %v1269_v56, 0.0 }
 0x366   : > { %v1314_v62 = vmax.f32 %v1280_v58, 0.0 }
 0x367   : > { %v1312_v0 = vmax.f32 %v1272_v60, 0.0 }
 0x368   : > { %v1330_v1 = vpack.c.bf16 %v1314_v62, %v1313_v61 }
 0x369   : > { %v1329_v2 = vpack.c.bf16 %v1312_v0, %v1311_v63 }
 0x36b   : > { %2428 = vmatprep.mubr.bf16.mxu1 %v1329_v2 }
 0x36c   : > { %2429 = vmatmul.mubr.bf16.gmra.mrb[28].mxu1 %v1330_v1 }
 0x407   : > { %v2402_v4 = vpop.f32.mrb[0].mxu1 }
 0x408   : > { %v1445_v5 = vadd.f32 %v2402_v4, %v3552_v3  ;;  %v1436_v6 = vpop.f32.mrb[1].mxu1 }
 0x409   : > { %v1437_v7 = vadd.f32 %v3552_v3, %v1436_v6  ;;  %v2403_v8 = vpop.f32.mrb[2].mxu1 }
 0x40a   : > { %v1448_v17 = vadd.f32 %v2403_v8, %v3552_v3  ;;  %v1439_v9 = vpop.f32.mrb[3].mxu1  ;;  %v1565_v11 = vmax.f32 %v1445_v5, 0.0 }
 0x40b   : > { %v1440_v10 = vadd.f32 %v3552_v3, %v1439_v9  ;;  %v1563_v13 = vmax.f32 %v1437_v7, 0.0 }
 0x40c   : > { %v1566_v12 = vmax.f32 %v1448_v17, 0.0 }
 0x40d   : > { %v1564_v14 = vmax.f32 %v1440_v10, 0.0 }
 0x40e   : > { %v2089_v15 = vpack.c.bf16 %v1566_v12, %v1565_v11 }
 0x40f   : > { %v2084_v16 = vpack.c.bf16 %v1564_v14, %v1563_v13  ;;  %v2406_v18 = vpop.f32.mrb[4].mxu1 }
 0x410   : > { %2161 = vst [vmem:[%s3466_s12 + $0x8] sm:$0xff] %v2089_v15   ;;  %v1461_v19 = vadd.f32 %v2406_v18, %v3552_v3  ;;  %v1452_v20 = vpop.f32.mrb[5].mxu1 }
 0x411   : > { %2085 = vst [vmem:[%s3466_s12] sm:$0xff] %v2084_v16   ;;  %v1453_v21 = vadd.f32 %v3552_v3, %v1452_v20  ;;  %v2407_v22 = vpop.f32.mrb[6].mxu1 }
 0x412   : > { %v1464_v23 = vadd.f32 %v2407_v22, %v3552_v3  ;;  %v1455_v24 = vpop.f32.mrb[7].mxu1  ;;  %v1569_v26 = vmax.f32 %v1461_v19, 0.0 }
 0x413   : > { %v1456_v25 = vadd.f32 %v3552_v3, %v1455_v24  ;;  %v1567_v28 = vmax.f32 %v1453_v21, 0.0 }
 0x414   : > { %v1570_v27 = vmax.f32 %v1464_v23, 0.0 }
 0x415   : > { %v1568_v29 = vmax.f32 %v1456_v25, 0.0 }
 0x416   : > { %v2099_v30 = vpack.c.bf16 %v1570_v27, %v1569_v26 }
 0x417   : > { %v2094_v31 = vpack.c.bf16 %v1568_v29, %v1567_v28  ;;  %v2410_v32 = vpop.f32.mrb[8].mxu1 }
 0x418   : > { %2163 = vst [vmem:[%s3466_s12 + $0x18] sm:$0xff] %v2099_v30   ;;  %v1477_v33 = vadd.f32 %v2410_v32, %v3552_v3  ;;  %v1468_v34 = vpop.f32.mrb[9].mxu1 }
 0x419   : > { %2162 = vst [vmem:[%s3466_s12 + $0x10] sm:$0xff] %v2094_v31   ;;  %v1469_v35 = vadd.f32 %v3552_v3, %v1468_v34  ;;  %v2411_v36 = vpop.f32.mrb[10].mxu1 }
 0x41a   : > { %v1480_v37 = vadd.f32 %v2411_v36, %v3552_v3  ;;  %v1471_v38 = vpop.f32.mrb[11].mxu1  ;;  %v1573_v40 = vmax.f32 %v1477_v33, 0.0 }
 0x41b   : > { %v1472_v39 = vadd.f32 %v3552_v3, %v1471_v38  ;;  %v1571_v42 = vmax.f32 %v1469_v35, 0.0 }
 0x41c   : > { %v1574_v41 = vmax.f32 %v1480_v37, 0.0 }
 0x41d   : > { %v1572_v43 = vmax.f32 %v1472_v39, 0.0 }
 0x41e   : > { %v2109_v44 = vpack.c.bf16 %v1574_v41, %v1573_v40 }
 0x41f   : > { %v2104_v45 = vpack.c.bf16 %v1572_v43, %v1571_v42  ;;  %v2414_v46 = vpop.f32.mrb[12].mxu1 }
 0x420   : > { %2165 = vst [vmem:[%s3466_s12 + $0x28] sm:$0xff] %v2109_v44   ;;  %v1493_v47 = vadd.f32 %v2414_v46, %v3552_v3  ;;  %v1484_v48 = vpop.f32.mrb[13].mxu1 }
 0x421   : > { %2164 = vst [vmem:[%s3466_s12 + $0x20] sm:$0xff] %v2104_v45   ;;  %v1485_v49 = vadd.f32 %v3552_v3, %v1484_v48  ;;  %v2415_v50 = vpop.f32.mrb[14].mxu1 }
 0x422   : > { %v1496_v51 = vadd.f32 %v2415_v50, %v3552_v3  ;;  %v1487_v52 = vpop.f32.mrb[15].mxu1  ;;  %v1577_v54 = vmax.f32 %v1493_v47, 0.0 }
 0x423   : > { %v1488_v53 = vadd.f32 %v3552_v3, %v1487_v52  ;;  %v1575_v56 = vmax.f32 %v1485_v49, 0.0 }
 0x424   : > { %v1578_v55 = vmax.f32 %v1496_v51, 0.0 }
 0x425   : > { %v1576_v57 = vmax.f32 %v1488_v53, 0.0 }
 0x426   : > { %v2119_v58 = vpack.c.bf16 %v1578_v55, %v1577_v54 }
 0x427   : > { %v2114_v59 = vpack.c.bf16 %v1576_v57, %v1575_v56  ;;  %v2418_v60 = vpop.f32.mrb[16].mxu1 }
 0x428   : > { %2167 = vst [vmem:[%s3466_s12 + $0x38] sm:$0xff] %v2119_v58   ;;  %v1509_v61 = vadd.f32 %v2418_v60, %v3552_v3  ;;  %v1500_v62 = vpop.f32.mrb[17].mxu1 }
 0x429   : > { %2166 = vst [vmem:[%s3466_s12 + $0x30] sm:$0xff] %v2114_v59   ;;  %v1501_v63 = vadd.f32 %v3552_v3, %v1500_v62  ;;  %v2419_v0 = vpop.f32.mrb[18].mxu1 }
 0x42a   : > { %v1512_v1 = vadd.f32 %v2419_v0, %v3552_v3  ;;  %v1503_v2 = vpop.f32.mrb[19].mxu1  ;;  %v1581_v5 = vmax.f32 %v1509_v61, 0.0 }
 0x42b   : > { %v1504_v4 = vadd.f32 %v3552_v3, %v1503_v2  ;;  %v1579_v7 = vmax.f32 %v1501_v63, 0.0 }
 0x42c   : > { %v1582_v6 = vmax.f32 %v1512_v1, 0.0 }
 0x42d   : > { %v1580_v8 = vmax.f32 %v1504_v4, 0.0 }
 0x42e   : > { %v2129_v17 = vpack.c.bf16 %v1582_v6, %v1581_v5 }
 0x42f   : > { %v2124_v9 = vpack.c.bf16 %v1580_v8, %v1579_v7  ;;  %v2422_v10 = vpop.f32.mrb[20].mxu1 }
 0x430   : > { %2169 = vst [vmem:[%s3466_s12 + $0x48] sm:$0xff] %v2129_v17   ;;  %v1525_v11 = vadd.f32 %v2422_v10, %v3552_v3  ;;  %v1516_v12 = vpop.f32.mrb[21].mxu1 }
 0x431   : > { %2168 = vst [vmem:[%s3466_s12 + $0x40] sm:$0xff] %v2124_v9   ;;  %v1517_v13 = vadd.f32 %v3552_v3, %v1516_v12  ;;  %v2423_v14 = vpop.f32.mrb[22].mxu1 }
 0x432   : > { %v1528_v15 = vadd.f32 %v2423_v14, %v3552_v3  ;;  %v1519_v16 = vpop.f32.mrb[23].mxu1  ;;  %v1585_v19 = vmax.f32 %v1525_v11, 0.0 }
 0x433   : > { %v1520_v18 = vadd.f32 %v3552_v3, %v1519_v16  ;;  %v1583_v21 = vmax.f32 %v1517_v13, 0.0 }
 0x434   : > { %v1586_v20 = vmax.f32 %v1528_v15, 0.0 }
 0x435   : > { %v1584_v22 = vmax.f32 %v1520_v18, 0.0 }
 0x436   : > { %v2139_v23 = vpack.c.bf16 %v1586_v20, %v1585_v19 }
 0x437   : > { %v2134_v24 = vpack.c.bf16 %v1584_v22, %v1583_v21  ;;  %v2426_v25 = vpop.f32.mrb[24].mxu1 }
 0x438   : > { %2171 = vst [vmem:[%s3466_s12 + $0x58] sm:$0xff] %v2139_v23   ;;  %v1541_v26 = vadd.f32 %v2426_v25, %v3552_v3  ;;  %v1532_v27 = vpop.f32.mrb[25].mxu1 }
 0x439   : > { %2170 = vst [vmem:[%s3466_s12 + $0x50] sm:$0xff] %v2134_v24   ;;  %v1533_v28 = vadd.f32 %v3552_v3, %v1532_v27  ;;  %v2427_v29 = vpop.f32.mrb[26].mxu1 }
 0x43a   : > { %v1544_v30 = vadd.f32 %v2427_v29, %v3552_v3  ;;  %v1535_v31 = vpop.f32.mrb[27].mxu1  ;;  %v1589_v33 = vmax.f32 %v1541_v26, 0.0 }
 0x43b   : > { %v1536_v32 = vadd.f32 %v3552_v3, %v1535_v31  ;;  %v1587_v35 = vmax.f32 %v1533_v28, 0.0 }
 0x43c   : > { %v1590_v34 = vmax.f32 %v1544_v30, 0.0 }
 0x43d   : > { %v1588_v36 = vmax.f32 %v1536_v32, 0.0 }
 0x43e   : > { %v2149_v37 = vpack.c.bf16 %v1590_v34, %v1589_v33 }
 0x43f   : > { %v2144_v38 = vpack.c.bf16 %v1588_v36, %v1587_v35  ;;  %v2430_v39 = vpop.f32.mrb[28].mxu1 }
 0x440   : > { %2173 = vst [vmem:[%s3466_s12 + $0x68] sm:$0xff] %v2149_v37   ;;  %v1557_v40 = vadd.f32 %v2430_v39, %v3552_v3  ;;  %v1548_v41 = vpop.f32.mrb[29].mxu1 }
 0x441   : > { %2172 = vst [vmem:[%s3466_s12 + $0x60] sm:$0xff] %v2144_v38   ;;  %v1549_v42 = vadd.f32 %v3552_v3, %v1548_v41  ;;  %v2431_v43 = vpop.f32.mrb[30].mxu1 }
 0x442   : > { %v1560_v44 = vadd.f32 %v2431_v43, %v3552_v3  ;;  %v1551_v45 = vpop.f32.mrb[31].mxu1  ;;  %v1593_v47 = vmax.f32 %v1557_v40, 0.0 }
 0x443   : > { %v1552_v46 = vadd.f32 %v3552_v3, %v1551_v45  ;;  %v1591_v49 = vmax.f32 %v1549_v42, 0.0 }
 0x444   : > { %v1594_v48 = vmax.f32 %v1560_v44, 0.0 }
 0x445   : > { %v1592_v50 = vmax.f32 %v1552_v46, 0.0 }
 0x446   : > { %v2159_v51 = vpack.c.bf16 %v1594_v48, %v1593_v47 }
 0x447   : > { %v2154_v52 = vpack.c.bf16 %v1592_v50, %v1591_v49 }
 0x448   : > { %2175 = vst [vmem:[%s3466_s12 + $0x78] sm:$0xff] %v2159_v51  }
 0x449   : > { %2174 = vst [vmem:[%s3466_s12 + $0x70] sm:$0xff] %v2154_v52  }
 0x44a PF: > { %s3771_s22 = sld [smem:[#allocation24_spill]]  ;;  %s3773_s30 = sld [smem:[#allocation28_spill]] }
 0x44b   : > { %s3774_s2 = sld [smem:[#allocation37_spill]]  ;;  %s1769_s3 = sshll.u32 %s3466_s12, 4  ;;  %s3609_s3 = int_to_ptr.vmem [resolvable:$true] %s1769_s3 }
 0x44c   : > { %s3613_s5 = scalar_lea.sflag [#allocation5], %s378_s16  ;;  %s2880_s9 = scalar_lea.vmem %s3609_s3, 2048 }
 0x44d   : > { %p2881_p13 = scmp.ne.s32.totalorder %s3609_s3, %s2880_s9  ;;  %s3056_s6 = smov [#allocation14]  }
 0x44e   : > { %s2884_s17 = sshll.u32 %s3056_s6, 4  ;;  %s2885_s17 = int_to_ptr.vmem [resolvable:$false] %s2884_s17 }
 0x44f   : > { %s2886_s11 = scalar_lea.vmem %s2885_s17, 4096  ;;  %p2887_p3 = scmp.lt.s32.totalorder %s3609_s3, %s2885_s17 }
 0x450   : > { %s2080_s27 = sshll.u32 %s3771_s22, 11  ;;  %p3775_p9 = scmp.ne.s32.totalorder %s3773_s30, 0 }
 0x451   : > { %s3606_s4 = scalar_lea.hbm %s3774_s2, %s2080_s27  ;;  %p2888_p7 = scmp.lt.s32.totalorder %s2886_s11, %s2880_s9 }
 0x452   : > { %p2882_p11 = pnand %p2881_p13, %p3775_p9 }
 0x453   : > { %p2889_p5 = por %p2888_p7, %p2887_p3 }
 0x454   : > { %p2883_p8 = pneg %p2882_p11 }
 0x456   : > { %p2890_p1 = pnand %p2889_p5, %p2883_p8 }
 0x458   : > { %2893 = shalt.err (!%p2890_p1)
}
 0x459   : > { %s2894_s13 = scalar_lea.hbm %s3606_s4, 2048  ;;  %s2898_s12 = scalar_lea.hbm %s3774_s2, 4096 }
 0x45a   : > { %p2895_p2 = scmp.ne.s32.totalorder %s3606_s4, %s2894_s13  ;;  %p2899_p10 = scmp.lt.u32.totalorder %s3606_s4, %s3774_s2 }
 0x45b   : > { %p2900_p0 = scmp.lt.u32.totalorder %s2898_s12, %s2894_s13  ;;  %p2902_p13 = scmp.lt.u32.totalorder %s2894_s13, %s3606_s4 }
 0x45c   : > { %p2896_p4 = pnand %p2895_p2, %p3775_p9 }
 0x45d   : > { %p2901_p6 = por %p2900_p0, %p2899_p10 }
 0x45e   : > { %p2897_p12 = pneg %p2896_p4 }
 0x45f   : > { %p2903_p11 = por %p2902_p13, %p2901_p6 }
 0x461   : > { %p2904_p8 = pnand %p2903_p11, %p2897_p12 }
 0x463   : > { %2907 = shalt.err (!%p2904_p8)
}
 0x464   : > { %s3057_s22 = smov 64   ;;  %s3058_s7 = smov 4  }
 0x465   : > { %2468 = dma.vmem_to_hbm [thread:$0]  (%p3775_p9), %s3609_s3, 2048, %s3606_s4, %s3613_s5, %s3057_s22, %s3057_s22, %s3058_s7  }
 0x466 PF: > { %s3776_s27 = sld [smem:[#allocation21_spill]]  ;;  %s3777_s20 = sld [smem:[#allocation29_spill]] }
 0x467   : > { %p2503_p3 = scmp.ge.s32.totalorder %s3042_s10, 2 }
 0x46c   : > { %s1784_s0 = sand.u32 1, %s3776_s27   ;;  %p3778_p7 = scmp.ne.s32.totalorder %s3777_s20, 0 }
 0x46d   : > { %s1785_s9 = scalar_lea.sflag [#allocation5], %s1784_s0 }
 0x46e   : > { %p2491_p5 = pnand %p2503_p3, %p3778_p7 }
 0x470   : > { %2985 = dma.done.wait (!%p2491_p5), %s1785_s9, 2048  }
 0x471   : > { %2987 = vsyncadd (!%p2491_p5), %s1785_s9, 4294965248  ;;  %s27_s10 = sadd.s32 1, %s3042_s10   ;;  %s3780_s17 = sld [smem:[#allocation22_spill]] }
 0x472   : > { %p3642_p1 = scmp.ge.s32.totalorder %s27_s10, 6   ;;  %s3781_s30 = smov %s3327_s21 }
 0x473   : > { %s3782_s7 = sld [smem:[#allocation25_spill]]  ;;  %s3783_s4 = sld [smem:[#allocation30_spill]] }
 0x474   : > { %s3784_s9 = sld [smem:[#allocation31_spill]]  ;;  %s3786_s22 = smov %s2998_s23 }
 0x475   : > { %s3787_s23 = smov %s3781_s30  ;;  %s3788_s24 = smov %s3006_s25 }
 0x476   : > { %s3789_s25 = smov %s3010_s26  ;;  %s3790_s26 = smov %s3384_s15 }
 0x477   : > { %s3785_s21 = smov %s3780_s17  ;;  %s3791_s27 = smov %s3018_s28 }
 0x478   : > { %s3792_s28 = smov %s3022_s29  ;;  %s3793_s29 = smov %s3330_s14 }
 0x479   : > { %s3794_s30 = smov %s3034_s8  ;;  %s3795_s8 = smov %s3783_s4 }
 0x47a   :  { %26 = sbr.rel (!%p3642_p1) target bundleno = 21 (0x15), region = 126 }
 0x481   :  { %1790 = vsyncpa [#allocation4], 1 }
 0x482   :  { %1792 = vsyncpa [#allocation4 + $0x1], 1 }
 0x483   :  { %1793 = vsyncpa [#allocation7], 1 }
 0x484   :  { %1795 = vsyncpa [#allocation7 + $0x1], 1 }
 0x485   :  { %1796 = vsyncpa [#allocation10], 1 }
 0x486   :  { %1797 = vsyncpa [#allocation13], 1 }
 0x487   :  { %1798 = vsyncpa [#allocation5], 1 }
 0x488   :  { %1800 = vsyncpa [#allocation5 + $0x1], 1 }

</bundles_post_ra>
